<compile_context>
chip_gen: v6e
topology: v6e:2x2x1
jax: 0.10.0
libtpu: 0.0.40
codegen_flags: <defaults>
</compile_context>

<pallas_src>
import functools
import math

import jax
import jax.numpy as jnp
from jax import lax
from jax.experimental import pallas as pl
from jax.experimental.pallas import tpu as pltpu


def _round_up(x, m):
    return (x + m - 1) // m * m


def _encoder_rnn_kernel(num_layers, sub_t, emb_ref, h0_ref, *rest):
    """One (batch-block, time-chunk) grid step.

    emb_ref : (Tt, BB, E_p)  bf16  time-chunk of embeddings (time-major)
    h0_ref  : (L, 1, H_p)    f32   initial hidden state (whole array in VMEM)
    per layer l: w_ih_l (in_l_p, H_p) bf16, w_hh_l (H_p, H_p) bf16,
                 bias_l (1, H_p) f32  (= b_ih + b_hh)
    fc_w : (H_p, C_p) bf16, fc_b : (1, C_p) f32
    out_ref : (Tt, BB, C_p)  f32
    scratch: h_scr  (L, BB, H_p) f32  hidden state carried across time chunks
             xs_scr (Tt, BB, H_p) f32 current layer's per-step outputs
    """
    n_params = 3 * num_layers + 2
    param_refs = rest[:n_params]
    out_ref = rest[n_params]
    h_scr = rest[n_params + 1]
    xs_scr = rest[n_params + 2]

    layer_refs = [param_refs[3 * l: 3 * l + 3] for l in range(num_layers)]
    fc_w_ref = param_refs[3 * num_layers]
    fc_b_ref = param_refs[3 * num_layers + 1]

    Tt, BB, _ = emb_ref.shape
    Hp = h_scr.shape[-1]
    Cp = out_ref.shape[-1]

    # First time-chunk of this batch block: broadcast the initial state
    # in-kernel (no batch-broadcast copy materialized in HBM).
    @pl.when(pl.program_id(1) == 0)
    def _():
        for l in range(num_layers):
            h_scr[l] = jnp.broadcast_to(h0_ref[l], (BB, Hp))

    for l in range(num_layers):
        w_ih_ref, w_hh_ref, bias_ref = layer_refs[l]
        w_ih = w_ih_ref[...]          # bf16 MXU operand
        bias = bias_ref[...]          # f32 add

        # Chunk-wide input projection, sub-tiled along time so the matmul
        # temporary stays ~sub_t*BB*H_p*4 bytes instead of Tt*BB*H_p*4.
        for s0 in range(0, Tt, sub_t):
            sl = pl.ds(s0, sub_t)
            if l == 0:
                x_in = emb_ref[sl]                        # already bf16
            else:
                x_in = xs_scr[sl].astype(jnp.bfloat16)
            proj = (
                jnp.dot(
                    x_in.reshape(sub_t * BB, x_in.shape[-1]),
                    w_ih,
                    preferred_element_type=jnp.float32,
                )
                + bias
            )
            xs_scr[sl] = proj.reshape(sub_t, BB, Hp)

        # TODO(synk): hold W_hh resident in the MXU via pltpu.matmul_push_rhs /
        # matmul_acc_lhs / matmul_pop; for now the bf16 weight load is hoisted
        # out of the serial loop and re-used by every step's jnp.dot.
        w_hh = w_hh_ref[...]

        def step(t, h_prev, w_hh=w_hh):
            h_new = jnp.tanh(
                xs_scr[t]
                + jnp.dot(h_prev.astype(jnp.bfloat16), w_hh,
                          preferred_element_type=jnp.float32)
            )
            xs_scr[t] = h_new
            return h_new

        h_scr[l] = lax.fori_loop(0, Tt, step, h_scr[l], unroll=min(16, Tt))

    # Per-step FC hoisted out of the recurrence, sub-tiled like the projection.
    fc_w = fc_w_ref[...]
    fc_b = fc_b_ref[...]
    for s0 in range(0, Tt, sub_t):
        sl = pl.ds(s0, sub_t)
        logits = (
            jnp.dot(
                xs_scr[sl].reshape(sub_t * BB, Hp).astype(jnp.bfloat16),
                fc_w,
                preferred_element_type=jnp.float32,
            )
            + fc_b
        )
        out_ref[sl] = logits.reshape(sub_t, BB, Cp)


def _tpu_tiling_params():
    """Per-generation batch-block cap, VMEM budget and max time-chunk length."""
    try:
        kind = jax.devices()[0].device_kind.lower()
    except Exception:
        kind = ""
    is_v5e = ("v5 lite" in kind) or ("v5e" in kind) or ("v5litepod" in kind)
    is_v7 = "v7" in kind
    bb_cap = 128 if is_v5e else 256              # v5e MXU is 128-wide
    # v7x has 64 MiB VMEM / TensorCore; v5e / v6e have 128 MiB.
    vmem_budget = (46 if is_v7 else 96) * 1024 * 1024
    t_cap = 128 if is_v7 else 256
    return bb_cap, vmem_budget, t_cap


def encoder_rnn_forward(tokens, params, *, time_block=None):
    """tokens: (B, T) int32.  Returns (B, T, num_classes) float32."""
    num_layers = params["num_layers"]
    emb_table = params["embedding"]               # (V, E)
    h0 = params["h0"]                             # (L, 1, H)

    B, T = tokens.shape
    E = emb_table.shape[1]
    H = h0.shape[-1]
    C = params["fc_w"].shape[0]

    E_p = _round_up(E, 128)
    H_p = _round_up(H, 128)
    C_p = _round_up(C, 128)

    bb_cap, vmem_budget, t_cap = _tpu_tiling_params()

    # Batch tiling: 16-row sublane packing for bf16 operands; split into >=2
    # batch blocks whenever possible so the "parallel" grid axis can feed both
    # TensorCores on v7x.
    SUB_LANE = 16
    B_p = _round_up(B, SUB_LANE)
    if B_p > bb_cap:
        BB = bb_cap
        B_p = _round_up(B_p, BB)
    elif B_p >= 2 * SUB_LANE:
        BB = _round_up((B_p + 1) // 2, SUB_LANE)
        B_p = _round_up(B_p, BB)
    else:
        BB = B_p

    # Time-chunk length from the per-generation VMEM budget:
    #   per time step: emb (bf16, double-buffered) + out (f32, double-buffered)
    #   + xs_scr (f32);  plus fixed weights / carried hidden state / temps.
    fixed = 0
    for l in range(num_layers):
        in_l_p = E_p if l == 0 else H_p
        fixed += in_l_p * H_p * 2 + H_p * H_p * 2 + H_p * 4
    fixed += H_p * C_p * 2 + C_p * 4                  # fc weights / bias
    fixed += num_layers * 8 * H_p * 4                 # h0 (sublane-padded)
    fixed += num_layers * BB * H_p * 4                # carried hidden state
    per_step = BB * (2 * E_p * 2 + 2 * C_p * 4 + H_p * 4)
    sub_temps = 2 * 32 * BB * max(H_p, C_p) * 4       # projection / FC temps
    avail = vmem_budget - fixed - sub_temps - (4 << 20)
    Tt = max(8, min(t_cap, avail // per_step))
    Tt = (Tt // 8) * 8
    if time_block is not None:
        Tt = max(8, min(Tt, _round_up(time_block, 8)))
    Tt = min(Tt, _round_up(T, 8))
    sub_t = math.gcd(Tt, 32)
    T_p = _round_up(T, Tt)

    # Glue: gather embeddings directly in time-major order (no HBM transpose
    # pre-pass of the activation tensor), cast to bf16, zero-pad.
    emb_tm = emb_table.astype(jnp.bfloat16)[jnp.transpose(tokens)]   # (T, B, E)
    emb_tm = jnp.pad(emb_tm, ((0, T_p - T), (0, B_p - B), (0, E_p - E)))

    h0_p = jnp.pad(h0.astype(jnp.float32), ((0, 0), (0, 0), (0, H_p - H)))  # (L,1,H_p)

    vmem_whole = lambda: pl.BlockSpec(memory_space=pltpu.MemorySpace.VMEM)

    args = [emb_tm, h0_p]
    in_specs = [
        pl.BlockSpec((Tt, BB, E_p), lambda b, t: (t, b, 0)),
        vmem_whole(),        # h0: grid-invariant, single VMEM copy
    ]

    for l in range(num_layers):
        in_l = E if l == 0 else H
        in_l_p = E_p if l == 0 else H_p
        w_ih = jnp.pad(params[f"w_ih_{l}"].T.astype(jnp.bfloat16),
                       ((0, in_l_p - in_l), (0, H_p - H)))
        w_hh = jnp.pad(params[f"w_hh_{l}"].T.astype(jnp.bfloat16),
                       ((0, H_p - H), (0, H_p - H)))
        bias = jnp.pad(
            (params[f"b_ih_{l}"] + params[f"b_hh_{l}"]).astype(jnp.float32)[None, :],
            ((0, 0), (0, H_p - H)))
        args += [w_ih, w_hh, bias]
        in_specs += [vmem_whole(), vmem_whole(), vmem_whole()]

    fc_w = jnp.pad(params["fc_w"].T.astype(jnp.bfloat16), ((0, H_p - H), (0, C_p - C)))
    fc_b = jnp.pad(params["fc_b"].astype(jnp.float32)[None, :], ((0, 0), (0, C_p - C)))
    args += [fc_w, fc_b]
    in_specs += [vmem_whole(), vmem_whole()]

    kernel = functools.partial(_encoder_rnn_kernel, num_layers, sub_t)

    out_tm = pl.pallas_call(
        kernel,
        out_shape=jax.ShapeDtypeStruct((T_p, B_p, C_p), jnp.float32),
        grid_spec=pltpu.PrefetchScalarGridSpec(
            num_scalar_prefetch=0,
            grid=(B_p // BB, T_p // Tt),
            in_specs=in_specs,
            out_specs=pl.BlockSpec((Tt, BB, C_p), lambda b, t: (t, b, 0)),
            scratch_shapes=[
                pltpu.VMEM((num_layers, BB, H_p), jnp.float32),  # carried hidden state
                pltpu.VMEM((Tt, BB, H_p), jnp.float32),          # per-chunk layer outputs
            ],
        ),
        compiler_params=pltpu.CompilerParams(
            dimension_semantics=("parallel", "arbitrary"),
            vmem_limit_bytes=vmem_budget,
        ),
    )(*args)

    # Drop padding, back to batch_first like PyTorch.
    return jnp.transpose(out_tm[:T, :B, :C], (1, 0, 2))


def encoder_rnn_reference(tokens, params):
    """Pure-JAX f32 reference (matches PyTorch nn.RNN(tanh, batch_first))."""
    num_layers = params["num_layers"]
    x = params["embedding"][tokens].astype(jnp.float32)          # (B, T, E)
    B = x.shape[0]
    H = params["h0"].shape[-1]
    for l in range(num_layers):
        w_ih = params[f"w_ih_{l}"].astype(jnp.float32)
        w_hh = params[f"w_hh_{l}"].astype(jnp.float32)
        b = (params[f"b_ih_{l}"] + params[f"b_hh_{l}"]).astype(jnp.float32)
        h0 = jnp.broadcast_to(params["h0"][l].astype(jnp.float32), (B, H))

        def step(h, x_t, w_ih=w_ih, w_hh=w_hh, b=b):
            h_new = jnp.tanh(x_t @ w_ih.T + h @ w_hh.T + b)
            return h_new, h_new

        _, ys = lax.scan(step, h0, jnp.transpose(x, (1, 0, 2)))
        x = jnp.transpose(ys, (1, 0, 2))                         # (B, T, H)
    return x @ params["fc_w"].T.astype(jnp.float32) + params["fc_b"].astype(jnp.float32)


def init_params(key, embedding_dims, vocab_size, hidden_state_sizes, num_classes):
    """Deterministic synthetic parameters matching the PyTorch module's shapes."""
    # TODO(synk): like the PyTorch module, only hidden_state_sizes[0] is used
    # (nn.RNN has a single hidden size); heterogeneous per-layer sizes are ignored.
    num_layers = len(hidden_state_sizes)
    H = hidden_state_sizes[0]
    E = embedding_dims

    keys = jax.random.split(key, 4 + 4 * num_layers)
    params = {"num_layers": num_layers}
    params["embedding"] = 0.1 * jax.random.normal(keys[0], (vocab_size, E), jnp.float32)
    params["h0"] = jax.random.normal(keys[1], (num_layers, 1, H), jnp.float32)
    params["fc_w"] = 0.1 * jax.random.normal(keys[2], (num_classes, H), jnp.float32)
    params["fc_b"] = 0.1 * jax.random.normal(keys[3], (num_classes,), jnp.float32)

    for l in range(num_layers):
        in_size = E if l == 0 else H
        k = keys[4 + 4 * l: 8 + 4 * l]
        params[f"w_ih_{l}"] = 0.1 * jax.random.normal(k[0], (H, in_size), jnp.float32)
        params[f"w_hh_{l}"] = 0.1 * jax.random.normal(k[1], (H, H), jnp.float32)
        params[f"b_ih_{l}"] = 0.1 * jax.random.normal(k[2], (H,), jnp.float32)
        params[f"b_hh_{l}"] = 0.1 * jax.random.normal(k[3], (H,), jnp.float32)
    return params


if __name__ == "__main__":
    # Small, module-consistent sizes.
    embedding_dims = 32
    vocab_size = 50
    hidden_state_sizes = [32, 32]   # num_layers = 2, hidden = 32
    num_classes = 8
    batch = 2
    seq_len = 8

    key = jax.random.PRNGKey(0)
    pkey, tkey = jax.random.split(key)
    params = init_params(pkey, embedding_dims, vocab_size, hidden_state_sizes, num_classes)

    tokens = jax.random.randint(tkey, (batch, seq_len), 0, vocab_size, dtype=jnp.int32)

    out = encoder_rnn_forward(tokens, params)
    out = jax.block_until_ready(out)
    assert out.shape == (batch, seq_len, num_classes), out.shape

    ref = jax.block_until_ready(encoder_rnn_reference(tokens, params))
    assert jnp.allclose(out, ref, atol=1e-2, rtol=1e-2), float(jnp.max(jnp.abs(out - ref)))

    print("KERNEL_OK")
</pallas_src>

<mosaic_0001>
module attributes {stable_mosaic.version = 11 : i64} {
  func.func @_encoder_rnn_kernel(%arg0: i32, %arg1: i32, %arg2: memref<8x16x128xbf16, #tpu.memory_space<vmem>>, %arg3: memref<2x1x128xf32, #tpu.memory_space<vmem>>, %arg4: memref<128x128xbf16, #tpu.memory_space<vmem>>, %arg5: memref<128x128xbf16, #tpu.memory_space<vmem>>, %arg6: memref<1x128xf32, #tpu.memory_space<vmem>>, %arg7: memref<128x128xbf16, #tpu.memory_space<vmem>>, %arg8: memref<128x128xbf16, #tpu.memory_space<vmem>>, %arg9: memref<1x128xf32, #tpu.memory_space<vmem>>, %arg10: memref<128x128xbf16, #tpu.memory_space<vmem>>, %arg11: memref<1x128xf32, #tpu.memory_space<vmem>>, %arg12: memref<8x16x128xf32, #tpu.memory_space<vmem>>, %arg13: memref<2x16x128xf32, #tpu.memory_space<vmem>>, %arg14: memref<8x16x128xf32, #tpu.memory_space<vmem>>) attributes {dimension_semantics = [#tpu.dimension_semantics<parallel>, #tpu.dimension_semantics<arbitrary>], iteration_bounds = array<i64: 1, 1>, scalar_prefetch = 0 : i64, scratch_operands = 2 : i64, tpu.core_type = #tpu.core_type<tc>, window_params = [{transform_indices = @transform_0, window_bounds = array<i64: 8, 16, 128>}, {pipeline_mode = #tpu.pipeline_mode<synchronous>, transform_indices = @transform_1, window_bounds = array<i64: 2, 1, 128>}, {pipeline_mode = #tpu.pipeline_mode<synchronous>, transform_indices = @transform_2, window_bounds = array<i64: 128, 128>}, {pipeline_mode = #tpu.pipeline_mode<synchronous>, transform_indices = @transform_3, window_bounds = array<i64: 128, 128>}, {pipeline_mode = #tpu.pipeline_mode<synchronous>, transform_indices = @transform_4, window_bounds = array<i64: 1, 128>}, {pipeline_mode = #tpu.pipeline_mode<synchronous>, transform_indices = @transform_5, window_bounds = array<i64: 128, 128>}, {pipeline_mode = #tpu.pipeline_mode<synchronous>, transform_indices = @transform_6, window_bounds = array<i64: 128, 128>}, {pipeline_mode = #tpu.pipeline_mode<synchronous>, transform_indices = @transform_7, window_bounds = array<i64: 1, 128>}, {pipeline_mode = #tpu.pipeline_mode<synchronous>, transform_indices = @transform_8, window_bounds = array<i64: 128, 128>}, {pipeline_mode = #tpu.pipeline_mode<synchronous>, transform_indices = @transform_9, window_bounds = array<i64: 1, 128>}, {transform_indices = @transform_10, window_bounds = array<i64: 8, 16, 128>}]} {
    %c0_i32 = arith.constant 0 : i32
    %0 = arith.cmpi eq, %arg1, %c0_i32 : i32
    %1 = arith.extui %0 : i1 to i32
    %c0_i32_0 = arith.constant 0 : i32
    %2 = arith.cmpi ne, %1, %c0_i32_0 : i32
    scf.if %2 {
      %c0_137 = arith.constant 0 : index
      %c0_138 = arith.constant 0 : index
      %c0_139 = arith.constant 0 : index
      %220 = vector.load %arg3[%c0_137, %c0_138, %c0_139] : memref<2x1x128xf32, #tpu.memory_space<vmem>>, vector<1x1x128xf32>
      %221 = vector.shape_cast %220 : vector<1x1x128xf32> to vector<1x128xf32>
      %222 = vector.shape_cast %221 : vector<1x128xf32> to vector<1x128xf32>
      %223 = vector.broadcast %222 : vector<1x128xf32> to vector<16x128xf32>
      %c0_140 = arith.constant 0 : index
      %c0_141 = arith.constant 0 : index
      %c0_142 = arith.constant 0 : index
      %224 = vector.load %arg13[%c0_140, %c0_141, %c0_142] : memref<2x16x128xf32, #tpu.memory_space<vmem>>, vector<1x16x128xf32>
      %225 = vector.shape_cast %224 : vector<1x16x128xf32> to vector<16x128xf32>
      %226 = vector.shape_cast %223 : vector<16x128xf32> to vector<1x16x128xf32>
      tpu.vector_store %arg13[%c0_140, %c0_141, %c0_142], %226 {strides = array<i32>} : memref<2x16x128xf32, #tpu.memory_space<vmem>>, vector<1x16x128xf32>,
      %c1_143 = arith.constant 1 : index
      %c0_144 = arith.constant 0 : index
      %c0_145 = arith.constant 0 : index
      %227 = vector.load %arg3[%c1_143, %c0_144, %c0_145] : memref<2x1x128xf32, #tpu.memory_space<vmem>>, vector<1x1x128xf32>
      %228 = vector.shape_cast %227 : vector<1x1x128xf32> to vector<1x128xf32>
      %229 = vector.shape_cast %228 : vector<1x128xf32> to vector<1x128xf32>
      %230 = vector.broadcast %229 : vector<1x128xf32> to vector<16x128xf32>
      %c1_146 = arith.constant 1 : index
      %c0_147 = arith.constant 0 : index
      %c0_148 = arith.constant 0 : index
      %231 = vector.load %arg13[%c1_146, %c0_147, %c0_148] : memref<2x16x128xf32, #tpu.memory_space<vmem>>, vector<1x16x128xf32>
      %232 = vector.shape_cast %231 : vector<1x16x128xf32> to vector<16x128xf32>
      %233 = vector.shape_cast %230 : vector<16x128xf32> to vector<1x16x128xf32>
      tpu.vector_store %arg13[%c1_146, %c0_147, %c0_148], %233 {strides = array<i32>} : memref<2x16x128xf32, #tpu.memory_space<vmem>>, vector<1x16x128xf32>,
    } else {
    }
    %c0 = arith.constant 0 : index
    %c0_1 = arith.constant 0 : index
    %3 = vector.load %arg4[%c0, %c0_1] : memref<128x128xbf16, #tpu.memory_space<vmem>>, vector<128x128xbf16>
    %c0_2 = arith.constant 0 : index
    %c0_3 = arith.constant 0 : index
    %4 = vector.load %arg6[%c0_2, %c0_3] : memref<1x128xf32, #tpu.memory_space<vmem>>, vector<1x128xf32>
    %c0_4 = arith.constant 0 : index
    %c0_5 = arith.constant 0 : index
    %c0_6 = arith.constant 0 : index
    %5 = vector.load %arg2[%c0_4, %c0_5, %c0_6] : memref<8x16x128xbf16, #tpu.memory_space<vmem>>, vector<8x16x128xbf16>
    %6 = vector.shape_cast %5 : vector<8x16x128xbf16> to vector<128x128xbf16>
    %cst = arith.constant dense<0.000000e+00> : vector<128x128xf32>
    %7 = tpu.matmul %6, %3, %cst {dimension_numbers = #tpu.dot_dimension_numbers<[1], [0], [0], [1], [0, 0, 1, 1], [], []>} : vector<128x128xbf16>, vector<128x128xbf16>, vector<128x128xf32> -> vector<128x128xf32>
    %8 = vector.broadcast %4 : vector<1x128xf32> to vector<128x128xf32>
    %9 = arith.addf %7, %8 : vector<128x128xf32>
    %10 = vector.shape_cast %9 : vector<128x128xf32> to vector<8x16x128xf32>
    %c0_7 = arith.constant 0 : index
    %c0_8 = arith.constant 0 : index
    %c0_9 = arith.constant 0 : index
    %11 = vector.load %arg14[%c0_7, %c0_8, %c0_9] : memref<8x16x128xf32, #tpu.memory_space<vmem>>, vector<8x16x128xf32>
    tpu.vector_store %arg14[%c0_7, %c0_8, %c0_9], %10 {strides = array<i32>} : memref<8x16x128xf32, #tpu.memory_space<vmem>>, vector<8x16x128xf32>,
    %c0_10 = arith.constant 0 : index
    %c0_11 = arith.constant 0 : index
    %12 = vector.load %arg5[%c0_10, %c0_11] : memref<128x128xbf16, #tpu.memory_space<vmem>>, vector<128x128xbf16>
    %c0_12 = arith.constant 0 : index
    %c0_13 = arith.constant 0 : index
    %c0_14 = arith.constant 0 : index
    %13 = vector.load %arg13[%c0_12, %c0_13, %c0_14] : memref<2x16x128xf32, #tpu.memory_space<vmem>>, vector<1x16x128xf32>
    %14 = vector.shape_cast %13 : vector<1x16x128xf32> to vector<16x128xf32>
    %c0_i32_15 = arith.constant 0 : i32
    %15 = arith.index_cast %c0_i32_15 : i32 to index
    %c0_16 = arith.constant 0 : index
    %c0_17 = arith.constant 0 : index
    %16 = vector.load %arg14[%15, %c0_16, %c0_17] : memref<8x16x128xf32, #tpu.memory_space<vmem>>, vector<1x16x128xf32>
    %17 = vector.shape_cast %16 : vector<1x16x128xf32> to vector<16x128xf32>
    %18 = arith.truncf %14 : vector<16x128xf32> to vector<16x128xbf16>
    %cst_18 = arith.constant dense<0.000000e+00> : vector<16x128xf32>
    %19 = tpu.matmul %18, %12, %cst_18 {dimension_numbers = #tpu.dot_dimension_numbers<[1], [0], [0], [1], [0, 0, 1, 1], [], []>} : vector<16x128xbf16>, vector<128x128xbf16>, vector<16x128xf32> -> vector<16x128xf32>
    %20 = arith.addf %17, %19 : vector<16x128xf32>
    %21 = math.tanh %20 : vector<16x128xf32>
    %22 = arith.index_cast %c0_i32_15 : i32 to index
    %c0_19 = arith.constant 0 : index
    %c0_20 = arith.constant 0 : index
    %23 = vector.load %arg14[%22, %c0_19, %c0_20] : memref<8x16x128xf32, #tpu.memory_space<vmem>>, vector<1x16x128xf32>
    %24 = vector.shape_cast %23 : vector<1x16x128xf32> to vector<16x128xf32>
    %25 = vector.shape_cast %21 : vector<16x128xf32> to vector<1x16x128xf32>
    tpu.vector_store %arg14[%22, %c0_19, %c0_20], %25 {strides = array<i32>} : memref<8x16x128xf32, #tpu.memory_space<vmem>>, vector<1x16x128xf32>,
    %c1_i32 = arith.constant 1 : i32
    %26 = arith.index_cast %c1_i32 : i32 to index
    %c0_21 = arith.constant 0 : index
    %c0_22 = arith.constant 0 : index
    %27 = vector.load %arg14[%26, %c0_21, %c0_22] : memref<8x16x128xf32, #tpu.memory_space<vmem>>, vector<1x16x128xf32>
    %28 = vector.shape_cast %27 : vector<1x16x128xf32> to vector<16x128xf32>
    %29 = arith.truncf %21 : vector<16x128xf32> to vector<16x128xbf16>
    %cst_23 = arith.constant dense<0.000000e+00> : vector<16x128xf32>
    %30 = tpu.matmul %29, %12, %cst_23 {dimension_numbers = #tpu.dot_dimension_numbers<[1], [0], [0], [1], [0, 0, 1, 1], [], []>} : vector<16x128xbf16>, vector<128x128xbf16>, vector<16x128xf32> -> vector<16x128xf32>
    %31 = arith.addf %28, %30 : vector<16x128xf32>
    %32 = math.tanh %31 : vector<16x128xf32>
    %33 = arith.index_cast %c1_i32 : i32 to index
    %c0_24 = arith.constant 0 : index
    %c0_25 = arith.constant 0 : index
    %34 = vector.load %arg14[%33, %c0_24, %c0_25] : memref<8x16x128xf32, #tpu.memory_space<vmem>>, vector<1x16x128xf32>
    %35 = vector.shape_cast %34 : vector<1x16x128xf32> to vector<16x128xf32>
    %36 = vector.shape_cast %32 : vector<16x128xf32> to vector<1x16x128xf32>
    tpu.vector_store %arg14[%33, %c0_24, %c0_25], %36 {strides = array<i32>} : memref<8x16x128xf32, #tpu.memory_space<vmem>>, vector<1x16x128xf32>,
    %c2_i32 = arith.constant 2 : i32
    %37 = arith.index_cast %c2_i32 : i32 to index
    %c0_26 = arith.constant 0 : index
    %c0_27 = arith.constant 0 : index
    %38 = vector.load %arg14[%37, %c0_26, %c0_27] : memref<8x16x128xf32, #tpu.memory_space<vmem>>, vector<1x16x128xf32>
    %39 = vector.shape_cast %38 : vector<1x16x128xf32> to vector<16x128xf32>
    %40 = arith.truncf %32 : vector<16x128xf32> to vector<16x128xbf16>
    %cst_28 = arith.constant dense<0.000000e+00> : vector<16x128xf32>
    %41 = tpu.matmul %40, %12, %cst_28 {dimension_numbers = #tpu.dot_dimension_numbers<[1], [0], [0], [1], [0, 0, 1, 1], [], []>} : vector<16x128xbf16>, vector<128x128xbf16>, vector<16x128xf32> -> vector<16x128xf32>
    %42 = arith.addf %39, %41 : vector<16x128xf32>
    %43 = math.tanh %42 : vector<16x128xf32>
    %44 = arith.index_cast %c2_i32 : i32 to index
    %c0_29 = arith.constant 0 : index
    %c0_30 = arith.constant 0 : index
    %45 = vector.load %arg14[%44, %c0_29, %c0_30] : memref<8x16x128xf32, #tpu.memory_space<vmem>>, vector<1x16x128xf32>
    %46 = vector.shape_cast %45 : vector<1x16x128xf32> to vector<16x128xf32>
    %47 = vector.shape_cast %43 : vector<16x128xf32> to vector<1x16x128xf32>
    tpu.vector_store %arg14[%44, %c0_29, %c0_30], %47 {strides = array<i32>} : memref<8x16x128xf32, #tpu.memory_space<vmem>>, vector<1x16x128xf32>,
    %c3_i32 = arith.constant 3 : i32
    %48 = arith.index_cast %c3_i32 : i32 to index
    %c0_31 = arith.constant 0 : index
    %c0_32 = arith.constant 0 : index
    %49 = vector.load %arg14[%48, %c0_31, %c0_32] : memref<8x16x128xf32, #tpu.memory_space<vmem>>, vector<1x16x128xf32>
    %50 = vector.shape_cast %49 : vector<1x16x128xf32> to vector<16x128xf32>
    %51 = arith.truncf %43 : vector<16x128xf32> to vector<16x128xbf16>
    %cst_33 = arith.constant dense<0.000000e+00> : vector<16x128xf32>
    %52 = tpu.matmul %51, %12, %cst_33 {dimension_numbers = #tpu.dot_dimension_numbers<[1], [0], [0], [1], [0, 0, 1, 1], [], []>} : vector<16x128xbf16>, vector<128x128xbf16>, vector<16x128xf32> -> vector<16x128xf32>
    %53 = arith.addf %50, %52 : vector<16x128xf32>
    %54 = math.tanh %53 : vector<16x128xf32>
    %55 = arith.index_cast %c3_i32 : i32 to index
    %c0_34 = arith.constant 0 : index
    %c0_35 = arith.constant 0 : index
    %56 = vector.load %arg14[%55, %c0_34, %c0_35] : memref<8x16x128xf32, #tpu.memory_space<vmem>>, vector<1x16x128xf32>
    %57 = vector.shape_cast %56 : vector<1x16x128xf32> to vector<16x128xf32>
    %58 = vector.shape_cast %54 : vector<16x128xf32> to vector<1x16x128xf32>
    tpu.vector_store %arg14[%55, %c0_34, %c0_35], %58 {strides = array<i32>} : memref<8x16x128xf32, #tpu.memory_space<vmem>>, vector<1x16x128xf32>,
    %c4_i32 = arith.constant 4 : i32
    %59 = arith.index_cast %c4_i32 : i32 to index
    %c0_36 = arith.constant 0 : index
    %c0_37 = arith.constant 0 : index
    %60 = vector.load %arg14[%59, %c0_36, %c0_37] : memref<8x16x128xf32, #tpu.memory_space<vmem>>, vector<1x16x128xf32>
    %61 = vector.shape_cast %60 : vector<1x16x128xf32> to vector<16x128xf32>
    %62 = arith.truncf %54 : vector<16x128xf32> to vector<16x128xbf16>
    %cst_38 = arith.constant dense<0.000000e+00> : vector<16x128xf32>
    %63 = tpu.matmul %62, %12, %cst_38 {dimension_numbers = #tpu.dot_dimension_numbers<[1], [0], [0], [1], [0, 0, 1, 1], [], []>} : vector<16x128xbf16>, vector<128x128xbf16>, vector<16x128xf32> -> vector<16x128xf32>
    %64 = arith.addf %61, %63 : vector<16x128xf32>
    %65 = math.tanh %64 : vector<16x128xf32>
    %66 = arith.index_cast %c4_i32 : i32 to index
    %c0_39 = arith.constant 0 : index
    %c0_40 = arith.constant 0 : index
    %67 = vector.load %arg14[%66, %c0_39, %c0_40] : memref<8x16x128xf32, #tpu.memory_space<vmem>>, vector<1x16x128xf32>
    %68 = vector.shape_cast %67 : vector<1x16x128xf32> to vector<16x128xf32>
    %69 = vector.shape_cast %65 : vector<16x128xf32> to vector<1x16x128xf32>
    tpu.vector_store %arg14[%66, %c0_39, %c0_40], %69 {strides = array<i32>} : memref<8x16x128xf32, #tpu.memory_space<vmem>>, vector<1x16x128xf32>,
    %c5_i32 = arith.constant 5 : i32
    %70 = arith.index_cast %c5_i32 : i32 to index
    %c0_41 = arith.constant 0 : index
    %c0_42 = arith.constant 0 : index
    %71 = vector.load %arg14[%70, %c0_41, %c0_42] : memref<8x16x128xf32, #tpu.memory_space<vmem>>, vector<1x16x128xf32>
    %72 = vector.shape_cast %71 : vector<1x16x128xf32> to vector<16x128xf32>
    %73 = arith.truncf %65 : vector<16x128xf32> to vector<16x128xbf16>
    %cst_43 = arith.constant dense<0.000000e+00> : vector<16x128xf32>
    %74 = tpu.matmul %73, %12, %cst_43 {dimension_numbers = #tpu.dot_dimension_numbers<[1], [0], [0], [1], [0, 0, 1, 1], [], []>} : vector<16x128xbf16>, vector<128x128xbf16>, vector<16x128xf32> -> vector<16x128xf32>
    %75 = arith.addf %72, %74 : vector<16x128xf32>
    %76 = math.tanh %75 : vector<16x128xf32>
    %77 = arith.index_cast %c5_i32 : i32 to index
    %c0_44 = arith.constant 0 : index
    %c0_45 = arith.constant 0 : index
    %78 = vector.load %arg14[%77, %c0_44, %c0_45] : memref<8x16x128xf32, #tpu.memory_space<vmem>>, vector<1x16x128xf32>
    %79 = vector.shape_cast %78 : vector<1x16x128xf32> to vector<16x128xf32>
    %80 = vector.shape_cast %76 : vector<16x128xf32> to vector<1x16x128xf32>
    tpu.vector_store %arg14[%77, %c0_44, %c0_45], %80 {strides = array<i32>} : memref<8x16x128xf32, #tpu.memory_space<vmem>>, vector<1x16x128xf32>,
    %c6_i32 = arith.constant 6 : i32
    %81 = arith.index_cast %c6_i32 : i32 to index
    %c0_46 = arith.constant 0 : index
    %c0_47 = arith.constant 0 : index
    %82 = vector.load %arg14[%81, %c0_46, %c0_47] : memref<8x16x128xf32, #tpu.memory_space<vmem>>, vector<1x16x128xf32>
    %83 = vector.shape_cast %82 : vector<1x16x128xf32> to vector<16x128xf32>
    %84 = arith.truncf %76 : vector<16x128xf32> to vector<16x128xbf16>
    %cst_48 = arith.constant dense<0.000000e+00> : vector<16x128xf32>
    %85 = tpu.matmul %84, %12, %cst_48 {dimension_numbers = #tpu.dot_dimension_numbers<[1], [0], [0], [1], [0, 0, 1, 1], [], []>} : vector<16x128xbf16>, vector<128x128xbf16>, vector<16x128xf32> -> vector<16x128xf32>
    %86 = arith.addf %83, %85 : vector<16x128xf32>
    %87 = math.tanh %86 : vector<16x128xf32>
    %88 = arith.index_cast %c6_i32 : i32 to index
    %c0_49 = arith.constant 0 : index
    %c0_50 = arith.constant 0 : index
    %89 = vector.load %arg14[%88, %c0_49, %c0_50] : memref<8x16x128xf32, #tpu.memory_space<vmem>>, vector<1x16x128xf32>
    %90 = vector.shape_cast %89 : vector<1x16x128xf32> to vector<16x128xf32>
    %91 = vector.shape_cast %87 : vector<16x128xf32> to vector<1x16x128xf32>
    tpu.vector_store %arg14[%88, %c0_49, %c0_50], %91 {strides = array<i32>} : memref<8x16x128xf32, #tpu.memory_space<vmem>>, vector<1x16x128xf32>,
    %c7_i32 = arith.constant 7 : i32
    %92 = arith.index_cast %c7_i32 : i32 to index
    %c0_51 = arith.constant 0 : index
    %c0_52 = arith.constant 0 : index
    %93 = vector.load %arg14[%92, %c0_51, %c0_52] : memref<8x16x128xf32, #tpu.memory_space<vmem>>, vector<1x16x128xf32>
    %94 = vector.shape_cast %93 : vector<1x16x128xf32> to vector<16x128xf32>
    %95 = arith.truncf %87 : vector<16x128xf32> to vector<16x128xbf16>
    %cst_53 = arith.constant dense<0.000000e+00> : vector<16x128xf32>
    %96 = tpu.matmul %95, %12, %cst_53 {dimension_numbers = #tpu.dot_dimension_numbers<[1], [0], [0], [1], [0, 0, 1, 1], [], []>} : vector<16x128xbf16>, vector<128x128xbf16>, vector<16x128xf32> -> vector<16x128xf32>
    %97 = arith.addf %94, %96 : vector<16x128xf32>
    %98 = math.tanh %97 : vector<16x128xf32>
    %99 = arith.index_cast %c7_i32 : i32 to index
    %c0_54 = arith.constant 0 : index
    %c0_55 = arith.constant 0 : index
    %100 = vector.load %arg14[%99, %c0_54, %c0_55] : memref<8x16x128xf32, #tpu.memory_space<vmem>>, vector<1x16x128xf32>
    %101 = vector.shape_cast %100 : vector<1x16x128xf32> to vector<16x128xf32>
    %102 = vector.shape_cast %98 : vector<16x128xf32> to vector<1x16x128xf32>
    tpu.vector_store %arg14[%99, %c0_54, %c0_55], %102 {strides = array<i32>} : memref<8x16x128xf32, #tpu.memory_space<vmem>>, vector<1x16x128xf32>,
    %c8_i32 = arith.constant 8 : i32
    %c0_56 = arith.constant 0 : index
    %c0_57 = arith.constant 0 : index
    %c0_58 = arith.constant 0 : index
    %103 = vector.load %arg13[%c0_56, %c0_57, %c0_58] : memref<2x16x128xf32, #tpu.memory_space<vmem>>, vector<1x16x128xf32>
    %104 = vector.shape_cast %103 : vector<1x16x128xf32> to vector<16x128xf32>
    %105 = vector.shape_cast %98 : vector<16x128xf32> to vector<1x16x128xf32>
    tpu.vector_store %arg13[%c0_56, %c0_57, %c0_58], %105 {strides = array<i32>} : memref<2x16x128xf32, #tpu.memory_space<vmem>>, vector<1x16x128xf32>,
    %c0_59 = arith.constant 0 : index
    %c0_60 = arith.constant 0 : index
    %106 = vector.load %arg7[%c0_59, %c0_60] : memref<128x128xbf16, #tpu.memory_space<vmem>>, vector<128x128xbf16>
    %c0_61 = arith.constant 0 : index
    %c0_62 = arith.constant 0 : index
    %107 = vector.load %arg9[%c0_61, %c0_62] : memref<1x128xf32, #tpu.memory_space<vmem>>, vector<1x128xf32>
    %c0_63 = arith.constant 0 : index
    %c0_64 = arith.constant 0 : index
    %c0_65 = arith.constant 0 : index
    %108 = vector.load %arg14[%c0_63, %c0_64, %c0_65] : memref<8x16x128xf32, #tpu.memory_space<vmem>>, vector<8x16x128xf32>
    %109 = arith.truncf %108 : vector<8x16x128xf32> to vector<8x16x128xbf16>
    %110 = vector.shape_cast %109 : vector<8x16x128xbf16> to vector<128x128xbf16>
    %cst_66 = arith.constant dense<0.000000e+00> : vector<128x128xf32>
    %111 = tpu.matmul %110, %106, %cst_66 {dimension_numbers = #tpu.dot_dimension_numbers<[1], [0], [0], [1], [0, 0, 1, 1], [], []>} : vector<128x128xbf16>, vector<128x128xbf16>, vector<128x128xf32> -> vector<128x128xf32>
    %112 = vector.broadcast %107 : vector<1x128xf32> to vector<128x128xf32>
    %113 = arith.addf %111, %112 : vector<128x128xf32>
    %114 = vector.shape_cast %113 : vector<128x128xf32> to vector<8x16x128xf32>
    %c0_67 = arith.constant 0 : index
    %c0_68 = arith.constant 0 : index
    %c0_69 = arith.constant 0 : index
    %115 = vector.load %arg14[%c0_67, %c0_68, %c0_69] : memref<8x16x128xf32, #tpu.memory_space<vmem>>, vector<8x16x128xf32>
    tpu.vector_store %arg14[%c0_67, %c0_68, %c0_69], %114 {strides = array<i32>} : memref<8x16x128xf32, #tpu.memory_space<vmem>>, vector<8x16x128xf32>,
    %c0_70 = arith.constant 0 : index
    %c0_71 = arith.constant 0 : index
    %116 = vector.load %arg8[%c0_70, %c0_71] : memref<128x128xbf16, #tpu.memory_space<vmem>>, vector<128x128xbf16>
    %c1 = arith.constant 1 : index
    %c0_72 = arith.constant 0 : index
    %c0_73 = arith.constant 0 : index
    %117 = vector.load %arg13[%c1, %c0_72, %c0_73] : memref<2x16x128xf32, #tpu.memory_space<vmem>>, vector<1x16x128xf32>
    %118 = vector.shape_cast %117 : vector<1x16x128xf32> to vector<16x128xf32>
    %c0_i32_74 = arith.constant 0 : i32
    %119 = arith.index_cast %c0_i32_74 : i32 to index
    %c0_75 = arith.constant 0 : index
    %c0_76 = arith.constant 0 : index
    %120 = vector.load %arg14[%119, %c0_75, %c0_76] : memref<8x16x128xf32, #tpu.memory_space<vmem>>, vector<1x16x128xf32>
    %121 = vector.shape_cast %120 : vector<1x16x128xf32> to vector<16x128xf32>
    %122 = arith.truncf %118 : vector<16x128xf32> to vector<16x128xbf16>
    %cst_77 = arith.constant dense<0.000000e+00> : vector<16x128xf32>
    %123 = tpu.matmul %122, %116, %cst_77 {dimension_numbers = #tpu.dot_dimension_numbers<[1], [0], [0], [1], [0, 0, 1, 1], [], []>} : vector<16x128xbf16>, vector<128x128xbf16>, vector<16x128xf32> -> vector<16x128xf32>
    %124 = arith.addf %121, %123 : vector<16x128xf32>
    %125 = math.tanh %124 : vector<16x128xf32>
    %126 = arith.index_cast %c0_i32_74 : i32 to index
    %c0_78 = arith.constant 0 : index
    %c0_79 = arith.constant 0 : index
    %127 = vector.load %arg14[%126, %c0_78, %c0_79] : memref<8x16x128xf32, #tpu.memory_space<vmem>>, vector<1x16x128xf32>
    %128 = vector.shape_cast %127 : vector<1x16x128xf32> to vector<16x128xf32>
    %129 = vector.shape_cast %125 : vector<16x128xf32> to vector<1x16x128xf32>
    tpu.vector_store %arg14[%126, %c0_78, %c0_79], %129 {strides = array<i32>} : memref<8x16x128xf32, #tpu.memory_space<vmem>>, vector<1x16x128xf32>,
    %c1_i32_80 = arith.constant 1 : i32
    %130 = arith.index_cast %c1_i32_80 : i32 to index
    %c0_81 = arith.constant 0 : index
    %c0_82 = arith.constant 0 : index
    %131 = vector.load %arg14[%130, %c0_81, %c0_82] : memref<8x16x128xf32, #tpu.memory_space<vmem>>, vector<1x16x128xf32>
    %132 = vector.shape_cast %131 : vector<1x16x128xf32> to vector<16x128xf32>
    %133 = arith.truncf %125 : vector<16x128xf32> to vector<16x128xbf16>
    %cst_83 = arith.constant dense<0.000000e+00> : vector<16x128xf32>
    %134 = tpu.matmul %133, %116, %cst_83 {dimension_numbers = #tpu.dot_dimension_numbers<[1], [0], [0], [1], [0, 0, 1, 1], [], []>} : vector<16x128xbf16>, vector<128x128xbf16>, vector<16x128xf32> -> vector<16x128xf32>
    %135 = arith.addf %132, %134 : vector<16x128xf32>
    %136 = math.tanh %135 : vector<16x128xf32>
    %137 = arith.index_cast %c1_i32_80 : i32 to index
    %c0_84 = arith.constant 0 : index
    %c0_85 = arith.constant 0 : index
    %138 = vector.load %arg14[%137, %c0_84, %c0_85] : memref<8x16x128xf32, #tpu.memory_space<vmem>>, vector<1x16x128xf32>
    %139 = vector.shape_cast %138 : vector<1x16x128xf32> to vector<16x128xf32>
    %140 = vector.shape_cast %136 : vector<16x128xf32> to vector<1x16x128xf32>
    tpu.vector_store %arg14[%137, %c0_84, %c0_85], %140 {strides = array<i32>} : memref<8x16x128xf32, #tpu.memory_space<vmem>>, vector<1x16x128xf32>,
    %c2_i32_86 = arith.constant 2 : i32
    %141 = arith.index_cast %c2_i32_86 : i32 to index
    %c0_87 = arith.constant 0 : index
    %c0_88 = arith.constant 0 : index
    %142 = vector.load %arg14[%141, %c0_87, %c0_88] : memref<8x16x128xf32, #tpu.memory_space<vmem>>, vector<1x16x128xf32>
    %143 = vector.shape_cast %142 : vector<1x16x128xf32> to vector<16x128xf32>
    %144 = arith.truncf %136 : vector<16x128xf32> to vector<16x128xbf16>
    %cst_89 = arith.constant dense<0.000000e+00> : vector<16x128xf32>
    %145 = tpu.matmul %144, %116, %cst_89 {dimension_numbers = #tpu.dot_dimension_numbers<[1], [0], [0], [1], [0, 0, 1, 1], [], []>} : vector<16x128xbf16>, vector<128x128xbf16>, vector<16x128xf32> -> vector<16x128xf32>
    %146 = arith.addf %143, %145 : vector<16x128xf32>
    %147 = math.tanh %146 : vector<16x128xf32>
    %148 = arith.index_cast %c2_i32_86 : i32 to index
    %c0_90 = arith.constant 0 : index
    %c0_91 = arith.constant 0 : index
    %149 = vector.load %arg14[%148, %c0_90, %c0_91] : memref<8x16x128xf32, #tpu.memory_space<vmem>>, vector<1x16x128xf32>
    %150 = vector.shape_cast %149 : vector<1x16x128xf32> to vector<16x128xf32>
    %151 = vector.shape_cast %147 : vector<16x128xf32> to vector<1x16x128xf32>
    tpu.vector_store %arg14[%148, %c0_90, %c0_91], %151 {strides = array<i32>} : memref<8x16x128xf32, #tpu.memory_space<vmem>>, vector<1x16x128xf32>,
    %c3_i32_92 = arith.constant 3 : i32
    %152 = arith.index_cast %c3_i32_92 : i32 to index
    %c0_93 = arith.constant 0 : index
    %c0_94 = arith.constant 0 : index
    %153 = vector.load %arg14[%152, %c0_93, %c0_94] : memref<8x16x128xf32, #tpu.memory_space<vmem>>, vector<1x16x128xf32>
    %154 = vector.shape_cast %153 : vector<1x16x128xf32> to vector<16x128xf32>
    %155 = arith.truncf %147 : vector<16x128xf32> to vector<16x128xbf16>
    %cst_95 = arith.constant dense<0.000000e+00> : vector<16x128xf32>
    %156 = tpu.matmul %155, %116, %cst_95 {dimension_numbers = #tpu.dot_dimension_numbers<[1], [0], [0], [1], [0, 0, 1, 1], [], []>} : vector<16x128xbf16>, vector<128x128xbf16>, vector<16x128xf32> -> vector<16x128xf32>
    %157 = arith.addf %154, %156 : vector<16x128xf32>
    %158 = math.tanh %157 : vector<16x128xf32>
    %159 = arith.index_cast %c3_i32_92 : i32 to index
    %c0_96 = arith.constant 0 : index
    %c0_97 = arith.constant 0 : index
    %160 = vector.load %arg14[%159, %c0_96, %c0_97] : memref<8x16x128xf32, #tpu.memory_space<vmem>>, vector<1x16x128xf32>
    %161 = vector.shape_cast %160 : vector<1x16x128xf32> to vector<16x128xf32>
    %162 = vector.shape_cast %158 : vector<16x128xf32> to vector<1x16x128xf32>
    tpu.vector_store %arg14[%159, %c0_96, %c0_97], %162 {strides = array<i32>} : memref<8x16x128xf32, #tpu.memory_space<vmem>>, vector<1x16x128xf32>,
    %c4_i32_98 = arith.constant 4 : i32
    %163 = arith.index_cast %c4_i32_98 : i32 to index
    %c0_99 = arith.constant 0 : index
    %c0_100 = arith.constant 0 : index
    %164 = vector.load %arg14[%163, %c0_99, %c0_100] : memref<8x16x128xf32, #tpu.memory_space<vmem>>, vector<1x16x128xf32>
    %165 = vector.shape_cast %164 : vector<1x16x128xf32> to vector<16x128xf32>
    %166 = arith.truncf %158 : vector<16x128xf32> to vector<16x128xbf16>
    %cst_101 = arith.constant dense<0.000000e+00> : vector<16x128xf32>
    %167 = tpu.matmul %166, %116, %cst_101 {dimension_numbers = #tpu.dot_dimension_numbers<[1], [0], [0], [1], [0, 0, 1, 1], [], []>} : vector<16x128xbf16>, vector<128x128xbf16>, vector<16x128xf32> -> vector<16x128xf32>
    %168 = arith.addf %165, %167 : vector<16x128xf32>
    %169 = math.tanh %168 : vector<16x128xf32>
    %170 = arith.index_cast %c4_i32_98 : i32 to index
    %c0_102 = arith.constant 0 : index
    %c0_103 = arith.constant 0 : index
    %171 = vector.load %arg14[%170, %c0_102, %c0_103] : memref<8x16x128xf32, #tpu.memory_space<vmem>>, vector<1x16x128xf32>
    %172 = vector.shape_cast %171 : vector<1x16x128xf32> to vector<16x128xf32>
    %173 = vector.shape_cast %169 : vector<16x128xf32> to vector<1x16x128xf32>
    tpu.vector_store %arg14[%170, %c0_102, %c0_103], %173 {strides = array<i32>} : memref<8x16x128xf32, #tpu.memory_space<vmem>>, vector<1x16x128xf32>,
    %c5_i32_104 = arith.constant 5 : i32
    %174 = arith.index_cast %c5_i32_104 : i32 to index
    %c0_105 = arith.constant 0 : index
    %c0_106 = arith.constant 0 : index
    %175 = vector.load %arg14[%174, %c0_105, %c0_106] : memref<8x16x128xf32, #tpu.memory_space<vmem>>, vector<1x16x128xf32>
    %176 = vector.shape_cast %175 : vector<1x16x128xf32> to vector<16x128xf32>
    %177 = arith.truncf %169 : vector<16x128xf32> to vector<16x128xbf16>
    %cst_107 = arith.constant dense<0.000000e+00> : vector<16x128xf32>
    %178 = tpu.matmul %177, %116, %cst_107 {dimension_numbers = #tpu.dot_dimension_numbers<[1], [0], [0], [1], [0, 0, 1, 1], [], []>} : vector<16x128xbf16>, vector<128x128xbf16>, vector<16x128xf32> -> vector<16x128xf32>
    %179 = arith.addf %176, %178 : vector<16x128xf32>
    %180 = math.tanh %179 : vector<16x128xf32>
    %181 = arith.index_cast %c5_i32_104 : i32 to index
    %c0_108 = arith.constant 0 : index
    %c0_109 = arith.constant 0 : index
    %182 = vector.load %arg14[%181, %c0_108, %c0_109] : memref<8x16x128xf32, #tpu.memory_space<vmem>>, vector<1x16x128xf32>
    %183 = vector.shape_cast %182 : vector<1x16x128xf32> to vector<16x128xf32>
    %184 = vector.shape_cast %180 : vector<16x128xf32> to vector<1x16x128xf32>
    tpu.vector_store %arg14[%181, %c0_108, %c0_109], %184 {strides = array<i32>} : memref<8x16x128xf32, #tpu.memory_space<vmem>>, vector<1x16x128xf32>,
    %c6_i32_110 = arith.constant 6 : i32
    %185 = arith.index_cast %c6_i32_110 : i32 to index
    %c0_111 = arith.constant 0 : index
    %c0_112 = arith.constant 0 : index
    %186 = vector.load %arg14[%185, %c0_111, %c0_112] : memref<8x16x128xf32, #tpu.memory_space<vmem>>, vector<1x16x128xf32>
    %187 = vector.shape_cast %186 : vector<1x16x128xf32> to vector<16x128xf32>
    %188 = arith.truncf %180 : vector<16x128xf32> to vector<16x128xbf16>
    %cst_113 = arith.constant dense<0.000000e+00> : vector<16x128xf32>
    %189 = tpu.matmul %188, %116, %cst_113 {dimension_numbers = #tpu.dot_dimension_numbers<[1], [0], [0], [1], [0, 0, 1, 1], [], []>} : vector<16x128xbf16>, vector<128x128xbf16>, vector<16x128xf32> -> vector<16x128xf32>
    %190 = arith.addf %187, %189 : vector<16x128xf32>
    %191 = math.tanh %190 : vector<16x128xf32>
    %192 = arith.index_cast %c6_i32_110 : i32 to index
    %c0_114 = arith.constant 0 : index
    %c0_115 = arith.constant 0 : index
    %193 = vector.load %arg14[%192, %c0_114, %c0_115] : memref<8x16x128xf32, #tpu.memory_space<vmem>>, vector<1x16x128xf32>
    %194 = vector.shape_cast %193 : vector<1x16x128xf32> to vector<16x128xf32>
    %195 = vector.shape_cast %191 : vector<16x128xf32> to vector<1x16x128xf32>
    tpu.vector_store %arg14[%192, %c0_114, %c0_115], %195 {strides = array<i32>} : memref<8x16x128xf32, #tpu.memory_space<vmem>>, vector<1x16x128xf32>,
    %c7_i32_116 = arith.constant 7 : i32
    %196 = arith.index_cast %c7_i32_116 : i32 to index
    %c0_117 = arith.constant 0 : index
    %c0_118 = arith.constant 0 : index
    %197 = vector.load %arg14[%196, %c0_117, %c0_118] : memref<8x16x128xf32, #tpu.memory_space<vmem>>, vector<1x16x128xf32>
    %198 = vector.shape_cast %197 : vector<1x16x128xf32> to vector<16x128xf32>
    %199 = arith.truncf %191 : vector<16x128xf32> to vector<16x128xbf16>
    %cst_119 = arith.constant dense<0.000000e+00> : vector<16x128xf32>
    %200 = tpu.matmul %199, %116, %cst_119 {dimension_numbers = #tpu.dot_dimension_numbers<[1], [0], [0], [1], [0, 0, 1, 1], [], []>} : vector<16x128xbf16>, vector<128x128xbf16>, vector<16x128xf32> -> vector<16x128xf32>
    %201 = arith.addf %198, %200 : vector<16x128xf32>
    %202 = math.tanh %201 : vector<16x128xf32>
    %203 = arith.index_cast %c7_i32_116 : i32 to index
    %c0_120 = arith.constant 0 : index
    %c0_121 = arith.constant 0 : index
    %204 = vector.load %arg14[%203, %c0_120, %c0_121] : memref<8x16x128xf32, #tpu.memory_space<vmem>>, vector<1x16x128xf32>
    %205 = vector.shape_cast %204 : vector<1x16x128xf32> to vector<16x128xf32>
    %206 = vector.shape_cast %202 : vector<16x128xf32> to vector<1x16x128xf32>
    tpu.vector_store %arg14[%203, %c0_120, %c0_121], %206 {strides = array<i32>} : memref<8x16x128xf32, #tpu.memory_space<vmem>>, vector<1x16x128xf32>,
    %c8_i32_122 = arith.constant 8 : i32
    %c1_123 = arith.constant 1 : index
    %c0_124 = arith.constant 0 : index
    %c0_125 = arith.constant 0 : index
    %207 = vector.load %arg13[%c1_123, %c0_124, %c0_125] : memref<2x16x128xf32, #tpu.memory_space<vmem>>, vector<1x16x128xf32>
    %208 = vector.shape_cast %207 : vector<1x16x128xf32> to vector<16x128xf32>
    %209 = vector.shape_cast %202 : vector<16x128xf32> to vector<1x16x128xf32>
    tpu.vector_store %arg13[%c1_123, %c0_124, %c0_125], %209 {strides = array<i32>} : memref<2x16x128xf32, #tpu.memory_space<vmem>>, vector<1x16x128xf32>,
    %c0_126 = arith.constant 0 : index
    %c0_127 = arith.constant 0 : index
    %210 = vector.load %arg10[%c0_126, %c0_127] : memref<128x128xbf16, #tpu.memory_space<vmem>>, vector<128x128xbf16>
    %c0_128 = arith.constant 0 : index
    %c0_129 = arith.constant 0 : index
    %211 = vector.load %arg11[%c0_128, %c0_129] : memref<1x128xf32, #tpu.memory_space<vmem>>, vector<1x128xf32>
    %c0_130 = arith.constant 0 : index
    %c0_131 = arith.constant 0 : index
    %c0_132 = arith.constant 0 : index
    %212 = vector.load %arg14[%c0_130, %c0_131, %c0_132] : memref<8x16x128xf32, #tpu.memory_space<vmem>>, vector<8x16x128xf32>
    %213 = vector.shape_cast %212 : vector<8x16x128xf32> to vector<128x128xf32>
    %214 = arith.truncf %213 : vector<128x128xf32> to vector<128x128xbf16>
    %cst_133 = arith.constant dense<0.000000e+00> : vector<128x128xf32>
    %215 = tpu.matmul %214, %210, %cst_133 {dimension_numbers = #tpu.dot_dimension_numbers<[1], [0], [0], [1], [0, 0, 1, 1], [], []>} : vector<128x128xbf16>, vector<128x128xbf16>, vector<128x128xf32> -> vector<128x128xf32>
    %216 = vector.broadcast %211 : vector<1x128xf32> to vector<128x128xf32>
    %217 = arith.addf %215, %216 : vector<128x128xf32>
    %218 = vector.shape_cast %217 : vector<128x128xf32> to vector<8x16x128xf32>
    %c0_134 = arith.constant 0 : index
    %c0_135 = arith.constant 0 : index
    %c0_136 = arith.constant 0 : index
    %219 = vector.load %arg12[%c0_134, %c0_135, %c0_136] : memref<8x16x128xf32, #tpu.memory_space<vmem>>, vector<8x16x128xf32>
    tpu.vector_store %arg12[%c0_134, %c0_135, %c0_136], %218 {strides = array<i32>} : memref<8x16x128xf32, #tpu.memory_space<vmem>>, vector<8x16x128xf32>,
    return
  }
  func.func @transform_0(%arg0: i32, %arg1: i32) -> (i32, i32, i32) {
    %c0_i32 = arith.constant 0 : i32
    %c0_i32_0 = arith.constant 0 : i32
    return %arg1, %arg0, %c0_i32 : i32, i32, i32
  }
  func.func @transform_1(%arg0: i32, %arg1: i32) -> (i32, i32, i32) {
    %c0_i32 = arith.constant 0 : i32
    %c0_i32_0 = arith.constant 0 : i32
    %c0_i32_1 = arith.constant 0 : i32
    %c0_i32_2 = arith.constant 0 : i32
    return %c0_i32, %c0_i32_0, %c0_i32_1 : i32, i32, i32
  }
  func.func @transform_2(%arg0: i32, %arg1: i32) -> (i32, i32) {
    %c0_i32 = arith.constant 0 : i32
    %c0_i32_0 = arith.constant 0 : i32
    %c0_i32_1 = arith.constant 0 : i32
    return %c0_i32, %c0_i32_0 : i32, i32
  }
  func.func @transform_3(%arg0: i32, %arg1: i32) -> (i32, i32) {
    %c0_i32 = arith.constant 0 : i32
    %c0_i32_0 = arith.constant 0 : i32
    %c0_i32_1 = arith.constant 0 : i32
    return %c0_i32, %c0_i32_0 : i32, i32
  }
  func.func @transform_4(%arg0: i32, %arg1: i32) -> (i32, i32) {
    %c0_i32 = arith.constant 0 : i32
    %c0_i32_0 = arith.constant 0 : i32
    %c0_i32_1 = arith.constant 0 : i32
    return %c0_i32, %c0_i32_0 : i32, i32
  }
  func.func @transform_5(%arg0: i32, %arg1: i32) -> (i32, i32) {
    %c0_i32 = arith.constant 0 : i32
    %c0_i32_0 = arith.constant 0 : i32
    %c0_i32_1 = arith.constant 0 : i32
    return %c0_i32, %c0_i32_0 : i32, i32
  }
  func.func @transform_6(%arg0: i32, %arg1: i32) -> (i32, i32) {
    %c0_i32 = arith.constant 0 : i32
    %c0_i32_0 = arith.constant 0 : i32
    %c0_i32_1 = arith.constant 0 : i32
    return %c0_i32, %c0_i32_0 : i32, i32
  }
  func.func @transform_7(%arg0: i32, %arg1: i32) -> (i32, i32) {
    %c0_i32 = arith.constant 0 : i32
    %c0_i32_0 = arith.constant 0 : i32
    %c0_i32_1 = arith.constant 0 : i32
    return %c0_i32, %c0_i32_0 : i32, i32
  }
  func.func @transform_8(%arg0: i32, %arg1: i32) -> (i32, i32) {
    %c0_i32 = arith.constant 0 : i32
    %c0_i32_0 = arith.constant 0 : i32
    %c0_i32_1 = arith.constant 0 : i32
    return %c0_i32, %c0_i32_0 : i32, i32
  }
  func.func @transform_9(%arg0: i32, %arg1: i32) -> (i32, i32) {
    %c0_i32 = arith.constant 0 : i32
    %c0_i32_0 = arith.constant 0 : i32
    %c0_i32_1 = arith.constant 0 : i32
    return %c0_i32, %c0_i32_0 : i32, i32
  }
  func.func @transform_10(%arg0: i32, %arg1: i32) -> (i32, i32, i32) {
    %c0_i32 = arith.constant 0 : i32
    %c0_i32_0 = arith.constant 0 : i32
    return %arg1, %arg0, %c0_i32 : i32, i32, i32
  }
}

</mosaic_0001>

<bundles_post_ra>
// kernel: tpu_custom_call.1
= control target key start
LH: loop header
LB: loop body
LE: loop exit
PB: predicated region body
PF: predicated region fallthrough
CT: control target
= control target key end

     0   :  { %15 = vsyncpa [#allocation5], 0  ;;  %s3319_s0 = inlined_call_operand.hbm [shape: bf16[8,16,128], index: 0, kind: input, shape index: {}]   ;;  %s3320_s1 = inlined_call_operand.hbm [shape: f32[2,1,128], index: 1, kind: input, shape index: {}]   ;;  %s3321_s2 = inlined_call_operand.hbm [shape: bf16[128,128], index: 2, kind: input, shape index: {}]   ;;  %s3322_s3 = inlined_call_operand.hbm [shape: bf16[128,128], index: 3, kind: input, shape index: {}]   ;;  %s3323_s4 = inlined_call_operand.vmem [shape: f32[1,128], index: 4, kind: input, shape index: {}]   ;;  %s3324_s5 = inlined_call_operand.hbm [shape: bf16[128,128], index: 5, kind: input, shape index: {}]   ;;  %s3325_s6 = inlined_call_operand.hbm [shape: bf16[128,128], index: 6, kind: input, shape index: {}]   ;;  %s3326_s7 = inlined_call_operand.vmem [shape: f32[1,128], index: 7, kind: input, shape index: {}]   ;;  %s3327_s8 = inlined_call_operand.hbm [shape: bf16[128,128], index: 8, kind: input, shape index: {}]   ;;  %s3328_s9 = inlined_call_operand.vmem [shape: f32[1,128], index: 9, kind: input, shape index: {}]   ;;  %s3329_s10 = inlined_call_operand.hbm [shape: f32[8,16,128], index: 10, kind: output, shape index: {}]  }
   0x1   :  { %16 = vsyncpa [#allocation8], 0 }
   0x2   :  { %17 = vsyncpa [#allocation11], 0 }
   0x3   :  { %18 = vsyncpa [#allocation14], 0 }
   0x4   :  { %19 = vsyncpa [#allocation6], 0  ;;  %s2743_s13 = smov [#allocation7]  }
   0x5   :  { %s37_s14 = sshll.u32 %s2743_s13, 4  ;;  %s38_s14 = int_to_ptr.vmem [resolvable:$true] %s37_s14 }
   0x6   :  { %s2581_s15 = scalar_lea.vmem %s38_s14, 32  ;;  %p2586_p1 = scmp.lt.s32.totalorder %s38_s14, %s38_s14 }
   0x7   :  { %p2582_p0 = scmp.ne.s32.totalorder %s38_s14, %s2581_s15  ;;  %p2587_p2 = scmp.lt.s32.totalorder %s2581_s15, %s2581_s15 }
   0x9   :  { %p2588_p3 = por %p2587_p2, %p2586_p1 }
   0xb   :  { %p2589_p4 = pnand %p2588_p3, %p2582_p0 }
   0xd   :  { %2592 = shalt.err (!%p2589_p4)
}
   0xe   :  { %s2744_s16 = smov 16   ;;  %s2745_s17 = smov 1  }
   0xf   :  { %43 = dma.hbm_to_vmem [thread:$0]  %s3320_s1, 32, %s38_s14, [#allocation8], %s2744_s16, %s2744_s16, %s2745_s17  }
  0x10   :  { %s2746_s20 = smov [#allocation10]   ;;  %s2747_s22 = smov [#allocation13]  }
  0x11   :  { %s61_s21 = sshll.u32 %s2746_s20, 4  ;;  %s87_s23 = sshll.u32 %s2747_s22, 4  ;;  %s62_s21 = int_to_ptr.vmem [resolvable:$true] %s61_s21  ;;  %s88_s23 = int_to_ptr.vmem [resolvable:$true] %s87_s23 }
  0x12   :  { %s2601_s24 = scalar_lea.vmem %s62_s21, 1024  ;;  %p2606_p6 = scmp.lt.s32.totalorder %s62_s21, %s62_s21 }
  0x13   :  { %p2602_p5 = scmp.ne.s32.totalorder %s62_s21, %s2601_s24  ;;  %p2607_p7 = scmp.lt.s32.totalorder %s2601_s24, %s2601_s24 }
  0x15   :  { %p2608_p8 = por %p2607_p7, %p2606_p6 }
  0x17   :  { %p2609_p9 = pnand %p2608_p8, %p2602_p5 }
  0x19   :  { %2612 = shalt.err (!%p2609_p9)
}
  0x1a   :  { %s2748_s25 = smov 64   ;;  %s2749_s26 = smov 4  }
  0x1b   :  { %67 = dma.hbm_to_vmem [thread:$0]  %s3322_s3, 1024, %s62_s21, [#allocation11], %s2748_s25, %s2748_s25, %s2749_s26  }
  0x1c   :  { %s2621_s1 = scalar_lea.vmem %s88_s23, 1024  ;;  %p2626_p11 = scmp.lt.s32.totalorder %s88_s23, %s88_s23 }
  0x1d   :  { %p2622_p10 = scmp.ne.s32.totalorder %s88_s23, %s2621_s1  ;;  %p2627_p12 = scmp.lt.s32.totalorder %s2621_s1, %s2621_s1 }
  0x1f   :  { %p2628_p13 = por %p2627_p12, %p2626_p11 }
  0x21   :  { %p2629_p0 = pnand %p2628_p13, %p2622_p10 }
  0x23   :  { %2632 = shalt.err (!%p2629_p0)
}
  0x24   :  { %93 = dma.hbm_to_vmem [thread:$0]  %s3325_s6, 1024, %s88_s23, [#allocation14], %s2748_s25, %s2748_s25, %s2749_s26  }
  0x25   :  { %s2750_s11 = smov [#allocation4]   ;;  %s2751_s13 = smov [#allocation9]  }
  0x26   :  { %s25_s12 = sshll.u32 %s2750_s11, 4  ;;  %s49_s3 = sshll.u32 %s2751_s13, 4  ;;  %s26_s12 = int_to_ptr.vmem [resolvable:$true] %s25_s12  ;;  %s50_s3 = int_to_ptr.vmem [resolvable:$true] %s49_s3 }
  0x27   :  { %s2641_s14 = scalar_lea.vmem %s26_s12, 1024  ;;  %p2646_p2 = scmp.lt.s32.totalorder %s26_s12, %s26_s12 }
  0x28   :  { %p2642_p1 = scmp.ne.s32.totalorder %s26_s12, %s2641_s14  ;;  %p2647_p3 = scmp.lt.s32.totalorder %s2641_s14, %s2641_s14 }
  0x2a   :  { %p2648_p4 = por %p2647_p3, %p2646_p2 }
  0x2c   :  { %p2649_p5 = pnand %p2648_p4, %p2642_p1 }
  0x2e   :  { %2652 = shalt.err (!%p2649_p5)
}
  0x2f   :  { %31 = dma.hbm_to_vmem [thread:$0]  %s3319_s0, 1024, %s26_s12, [#allocation5], %s2748_s25, %s2748_s25, %s2749_s26  }
  0x30   :  { %s2661_s6 = scalar_lea.vmem %s50_s3, 1024  ;;  %p2666_p7 = scmp.lt.s32.totalorder %s50_s3, %s50_s3 }
  0x31   :  { %p2662_p6 = scmp.ne.s32.totalorder %s50_s3, %s2661_s6  ;;  %p2667_p8 = scmp.lt.s32.totalorder %s2661_s6, %s2661_s6 }
  0x33   :  { %p2668_p9 = por %p2667_p8, %p2666_p7 }
  0x35   :  { %p2669_p10 = pnand %p2668_p9, %p2662_p6 }
  0x37   :  { %2672 = shalt.err (!%p2669_p10)
}
  0x38   :  { %55 = dma.hbm_to_vmem [thread:$0]  %s3321_s2, 1024, %s50_s3, [#allocation8], %s2748_s25, %s2748_s25, %s2749_s26  }
  0x39   :  { %s2752_s19 = smov [#allocation12]   ;;  %s2753_s21 = smov [#allocation15]  }
  0x3a   :  { %s75_s20 = sshll.u32 %s2752_s19, 4  ;;  %s101_s0 = sshll.u32 %s2753_s21, 4  ;;  %s76_s20 = int_to_ptr.vmem [resolvable:$true] %s75_s20  ;;  %s102_s0 = int_to_ptr.vmem [resolvable:$true] %s101_s0 }
  0x3b   :  { %s2681_s22 = scalar_lea.vmem %s76_s20, 1024  ;;  %p2686_p12 = scmp.lt.s32.totalorder %s76_s20, %s76_s20 }
  0x3c   :  { %p2682_p11 = scmp.ne.s32.totalorder %s76_s20, %s2681_s22  ;;  %p2687_p13 = scmp.lt.s32.totalorder %s2681_s22, %s2681_s22 }
  0x3e   :  { %p2688_p0 = por %p2687_p13, %p2686_p12 }
  0x40   :  { %p2689_p1 = pnand %p2688_p0, %p2682_p11 }
  0x42   :  { %2692 = shalt.err (!%p2689_p1)
}
  0x43   :  { %81 = dma.hbm_to_vmem [thread:$0]  %s3324_s5, 1024, %s76_s20, [#allocation11], %s2748_s25, %s2748_s25, %s2749_s26  }
  0x44   :  { %s2701_s2 = scalar_lea.vmem %s102_s0, 1024  ;;  %p2706_p3 = scmp.lt.s32.totalorder %s102_s0, %s102_s0 }
  0x45   :  { %p2702_p2 = scmp.ne.s32.totalorder %s102_s0, %s2701_s2  ;;  %p2707_p4 = scmp.lt.s32.totalorder %s2701_s2, %s2701_s2 }
  0x47   :  { %p2708_p5 = por %p2707_p4, %p2706_p3 }
  0x49   :  { %p2709_p6 = pnand %p2708_p5, %p2702_p2 }
  0x4b   :  { %2712 = shalt.err (!%p2709_p6)
}
  0x4c   :  { %107 = dma.hbm_to_vmem [thread:$0]  %s3327_s8, 1024, %s102_s0, [#allocation14], %s2748_s25, %s2748_s25, %s2749_s26  }
  0x4d   :  { %2733 = dma.done.wait [#allocation5], 1024  }
  0x4e   :  { %2734 = vsyncadd [#allocation5], 4294966272 }
  0x4f   :  { %2735 = dma.done.wait [#allocation8], 1056  }
  0x50   :  { %2736 = vsyncadd [#allocation8], 4294966240 }
  0x51   :  { %2737 = dma.done.wait [#allocation11], 2048  }
  0x52   :  { %2738 = vsyncadd [#allocation11], 4294965248 }
  0x53   :  { %2739 = dma.done.wait [#allocation14], 2048  }
  0x54   :  { %2740 = vsyncadd [#allocation14], 4294965248  ;;  %v2754_v0 = vmov 0.0   ;;  %vm2755_vm0 = vmmov 0   ;;  %v2461_v1 = vld [vmem:[#allocation9 + $0x38] sm:$0xff]   ;;  %v2462_v2 = vld [vmem:[#allocation9 + $0x30] sm:$0xff]  }
  0x55   :  { %2081 = vmatprep.subr.bf16.mxu0 %v2754_v0  ;;  %2097 = vmatprep.mubr.msk.bf16.mxu0 %vm2755_vm0, %v2754_v0  ;;  %v2463_v3 = vld [vmem:[#allocation9 + $0x28] sm:$0xff]   ;;  %v2464_v4 = vld [vmem:[#allocation9 + $0x20] sm:$0xff]   ;;  %v2856_v6 = vld [vmem:[#allocation10 + $0x38] sm:$0xff]  }
  0x56   :  { %2029 = vmatprep.subr.bf16.mxu1 %v2461_v1  ;;  %v2469_v5 = vld [vmem:[#allocation4] sm:$0xff]   ;;  %2082 = vmatpush3.bf16.msra.mxu0 %v2856_v6  ;;  %v2860_v8 = vld [vmem:[#allocation10 + $0x30] sm:$0xff]   ;;  %v2864_v10 = vld [vmem:[#allocation10 + $0x28] sm:$0xff]  }
  0x57   :  { %2030 = vmatpush3.bf16.msra.mxu1 %v2461_v1  ;;  %2045 = vmatprep.mubr.bf16.mxu1 %v2469_v5  ;;  %v2465_v7 = vld [vmem:[#allocation9 + $0x18] sm:$0xff]   ;;  %v2466_v9 = vld [vmem:[#allocation9 + $0x10] sm:$0xff]   ;;  %v2467_v11 = vld [vmem:[#allocation9 + $0x8] sm:$0xff]  }
  0x58   :  { %2031 = vmatprep.subr.bf16.mxu1 %v2462_v2  ;;  %2083 = vmatprep.subr.bf16.mxu0 %v2754_v0  ;;  %v2868_v12 = vld [vmem:[#allocation10 + $0x20] sm:$0xff]   ;;  %v2870_v14 = vld [vmem:[#allocation10 + $0x18] sm:$0xff]   ;;  %v2874_v16 = vld [vmem:[#allocation10 + $0x10] sm:$0xff]  }
  0x59   :  { %v2468_v13 = vld [vmem:[#allocation9] sm:$0xff]   ;;  %v2473_v17 = vld [vmem:[#allocation4 + $0x10] sm:$0xff]   ;;  %v2474_v19 = vld [vmem:[#allocation4 + $0x18] sm:$0xff]  }
  0x5a   :  { %2084 = vmatpush3.bf16.msra.mxu0 %v2860_v8  ;;  %v2470_v15 = vld [vmem:[#allocation4 + $0x8] sm:$0xff]   ;;  %v2477_v21 = vld [vmem:[#allocation4 + $0x20] sm:$0xff]   ;;  %v2481_v23 = vld [vmem:[#allocation4 + $0x30] sm:$0xff]  }
  0x5b   :  { %2032 = vmatpush3.bf16.msra.mxu1 %v2462_v2  ;;  %2085 = vmatprep.subr.bf16.mxu0 %v2754_v0  ;;  %v2879_v18 = vld [vmem:[#allocation10 + $0x8] sm:$0xff]   ;;  %v2885_v20 = vld [vmem:[#allocation10] sm:$0xff]   ;;  %v2482_v24 = vld [vmem:[#allocation4 + $0x38] sm:$0xff]  }
  0x5c   :  { %2033 = vmatprep.subr.bf16.mxu1 %v2463_v3  ;;  %v2478_v22 = vld [vmem:[#allocation4 + $0x28] sm:$0xff]   ;;  %v1784_v25 = vld [vmem:[#allocation7] ss:$0 sm:$0xff] }
  0x5d   :  { %v424_v26 = vpack.c.bf16 %v1784_v25, %v1784_v25  ;;  %v1786_v27 = vld [vmem:[%s3323_s4] ss:$0 sm:$0xff] }
  0x5e   :  { %2086 = vmatpush3.bf16.msra.mxu0 %v2864_v10 }
  0x5f   :  { %2034 = vmatpush3.bf16.msra.mxu1 %v2463_v3  ;;  %2087 = vmatprep.subr.bf16.mxu0 %v2754_v0 }
  0x60   :  { %2035 = vmatprep.subr.bf16.mxu1 %v2464_v4 }
  0x62   :  { %2088 = vmatpush3.bf16.msra.mxu0 %v2868_v12 }
  0x63   :  { %2036 = vmatpush3.bf16.msra.mxu1 %v2464_v4  ;;  %2089 = vmatprep.subr.bf16.mxu0 %v2754_v0 }
  0x64   :  { %2037 = vmatprep.subr.bf16.mxu1 %v2465_v7 }
  0x66   :  { %2090 = vmatpush3.bf16.msra.mxu0 %v2870_v14 }
  0x67   :  { %2038 = vmatpush3.bf16.msra.mxu1 %v2465_v7  ;;  %2091 = vmatprep.subr.bf16.mxu0 %v2754_v0 }
  0x68   :  { %2039 = vmatprep.subr.bf16.mxu1 %v2466_v9 }
  0x6a   :  { %2092 = vmatpush3.bf16.msra.mxu0 %v2874_v16 }
  0x6b   :  { %2040 = vmatpush3.bf16.msra.mxu1 %v2466_v9  ;;  %2093 = vmatprep.subr.bf16.mxu0 %v2754_v0 }
  0x6c   :  { %2041 = vmatprep.subr.bf16.mxu1 %v2467_v11 }
  0x6e   :  { %2094 = vmatpush3.bf16.msra.mxu0 %v2879_v18 }
  0x6f   :  { %2042 = vmatpush3.bf16.msra.mxu1 %v2467_v11  ;;  %2095 = vmatprep.subr.bf16.mxu0 %v2754_v0 }
  0x70   :  { %2043 = vmatprep.subr.bf16.mxu1 %v2468_v13 }
  0x72   :  { %2096 = vmatpush3.bf16.msra.mxu0 %v2885_v20 }
  0x73   :  { %2044 = vmatpush3.bf16.msra.mxu1 %v2468_v13  ;;  %2121 = vmatprep.subr.bf16.mxu0 %v2754_v0 }
  0x74   :  { %2061 = vmatprep.subr.bf16.mxu1 %v2754_v0 }
  0x76   :  { %2046 = vmatmul.mubr.bf16.vlgmr.msra.gmra.mxu1 %v2470_v15 }
  0x77   :  { %2062 = vmatpush3.bf16.msra.mxu1 %v2856_v6  ;;  %2049 = vmatprep.mubr.bf16.mxu1 %v2473_v17 }
  0x78   :  { %2063 = vmatprep.subr.bf16.mxu1 %v2754_v0 }
  0x7b   :  { %2064 = vmatpush3.bf16.msra.mxu1 %v2860_v8 }
  0x7c   :  { %2065 = vmatprep.subr.bf16.mxu1 %v2754_v0 }
  0x7e   :  { %2050 = vmatmul.mubr.bf16.gmra.mxu1 %v2474_v19 }
  0x7f   :  { %2066 = vmatpush3.bf16.msra.mxu1 %v2864_v10  ;;  %2053 = vmatprep.mubr.bf16.mxu1 %v2477_v21 }
  0x80   :  { %2067 = vmatprep.subr.bf16.mxu1 %v2754_v0 }
  0x83   :  { %2068 = vmatpush3.bf16.msra.mxu1 %v2868_v12 }
  0x84   :  { %2069 = vmatprep.subr.bf16.mxu1 %v2754_v0 }
  0x86   :  { %2054 = vmatmul.mubr.bf16.gmra.mxu1 %v2478_v22 }
  0x87   :  { %2070 = vmatpush3.bf16.msra.mxu1 %v2870_v14  ;;  %2057 = vmatprep.mubr.bf16.mxu1 %v2481_v23 }
  0x88   :  { %2071 = vmatprep.subr.bf16.mxu1 %v2754_v0 }
  0x8b   :  { %2072 = vmatpush3.bf16.msra.mxu1 %v2874_v16 }
  0x8c   :  { %2073 = vmatprep.subr.bf16.mxu1 %v2754_v0 }
  0x8e   :  { %2058 = vmatmul.mubr.bf16.gmra.mxu1 %v2482_v24 }
  0x8f   :  { %2074 = vmatpush3.bf16.msra.mxu1 %v2879_v18  ;;  %2077 = vmatprep.mubr.msk.bf16.mxu1 %vm2755_vm0, %v2754_v0 }
  0x90   :  { %2075 = vmatprep.subr.bf16.mxu1 %v2754_v0 }
  0x93   :  { %2076 = vmatpush3.bf16.msra.mxu1 %v2885_v20 }
  0x94   :  { %2101 = vmatprep.subr.bf16.mxu1 %v2754_v0 }
  0x96   :  { %2078 = vmatmul.mubr.bf16.vlgmr.msra.gmra.mxu1 %v424_v26 }
  0x97   :  { %2102 = vmatpush3.bf16.msra.mxu1 %v2856_v6  ;;  %2117 = vmatprep.mubr.msk.bf16.mxu1 %vm2755_vm0, %v2754_v0 }
  0x98   :  { %2103 = vmatprep.subr.bf16.mxu1 %v2754_v0 }
  0x9b   :  { %2104 = vmatpush3.bf16.msra.mxu1 %v2860_v8 }
  0x9c   :  { %2105 = vmatprep.subr.bf16.mxu1 %v2754_v0 }
  0x9f   :  { %2106 = vmatpush3.bf16.msra.mxu1 %v2864_v10 }
  0xa0   :  { %2107 = vmatprep.subr.bf16.mxu1 %v2754_v0 }
  0xa3   :  { %2108 = vmatpush3.bf16.msra.mxu1 %v2868_v12 }
  0xa4   :  { %2109 = vmatprep.subr.bf16.mxu1 %v2754_v0 }
  0xa7   :  { %2110 = vmatpush3.bf16.msra.mxu1 %v2870_v14 }
  0xa8   :  { %2111 = vmatprep.subr.bf16.mxu1 %v2754_v0 }
  0xab   :  { %2112 = vmatpush3.bf16.msra.mxu1 %v2874_v16 }
  0xac   :  { %2113 = vmatprep.subr.bf16.mxu1 %v2754_v0 }
  0xaf   :  { %2114 = vmatpush3.bf16.msra.mxu1 %v2879_v18 }
  0xb0   :  { %2115 = vmatprep.subr.bf16.mxu1 %v2754_v0 }
  0xb3   :  { %2116 = vmatpush3.bf16.msra.mxu1 %v2885_v20 }
  0xb4   :  { %2141 = vmatprep.subr.bf16.mxu1 %v2754_v0 }
 0x136   :  { %v2047_v28 = vpop.f32.mrf.mxu1 }
 0x137   :  { %v334_v29 = vadd.f32 %v2047_v28, %v1786_v27 }
 0x138   :  { %v325_v30 = vpop.f32.mrf.mxu1 }
 0x139   :  { %v326_v58 = vadd.f32 %v1786_v27, %v325_v30 }
 0x13a   :  { %v2048_v31 = vpop.f32.mrf.mxu1 }
 0x13b   :  { %v337_v32 = vadd.f32 %v2048_v31, %v1786_v27 }
 0x13c   :  { %v328_v33 = vpop.f32.mrf.mxu1 }
 0x13d   :  { %v329_v62 = vadd.f32 %v1786_v27, %v328_v33 }
 0x13e   :  { %v2051_v34 = vpop.f32.mrf.mxu1 }
 0x13f   :  { %v2928_v35 = vadd.f32 %v2051_v34, %v1786_v27 }
 0x140   :  { %v341_v36 = vpop.f32.mrf.mxu1 }
 0x141   :  { %v2930_v37 = vadd.f32 %v1786_v27, %v341_v36 }
 0x142   :  { %v2052_v38 = vpop.f32.mrf.mxu1 }
 0x143   :  { %v2932_v39 = vadd.f32 %v2052_v38, %v1786_v27 }
 0x144   :  { %v344_v40 = vpop.f32.mrf.mxu1 }
 0x145   :  { %v2934_v41 = vadd.f32 %v1786_v27, %v344_v40 }
 0x146   :  { %v2055_v42 = vpop.f32.mrf.mxu1 }
 0x147   :  { %v2936_v43 = vadd.f32 %v2055_v42, %v1786_v27 }
 0x148   :  { %v357_v44 = vpop.f32.mrf.mxu1 }
 0x149   :  { %v2938_v45 = vadd.f32 %v1786_v27, %v357_v44 }
 0x14a   :  { %v2056_v46 = vpop.f32.mrf.mxu1 }
 0x14b   :  { %v2940_v47 = vadd.f32 %v2056_v46, %v1786_v27 }
 0x14c   :  { %v360_v48 = vpop.f32.mrf.mxu1 }
 0x14d   :  { %v2942_v49 = vadd.f32 %v1786_v27, %v360_v48 }
 0x14e   :  { %v2059_v50 = vpop.f32.mrf.mxu1 }
 0x14f   :  { %v2944_v51 = vadd.f32 %v2059_v50, %v1786_v27 }
 0x150   :  { %v373_v52 = vpop.f32.mrf.mxu1 }
 0x151   :  { %v2946_v53 = vadd.f32 %v1786_v27, %v373_v52 }
 0x152   :  { %v2060_v54 = vpop.f32.mrf.mxu1 }
 0x153   :  { %v2948_v55 = vadd.f32 %v2060_v54, %v1786_v27 }
 0x154   :  { %v376_v56 = vpop.f32.mrf.mxu1 }
 0x155   :  { %v2950_v57 = vadd.f32 %v1786_v27, %v376_v56 }
 0x156   :  { %v507_v59 = vpop.f32.mrf.mxu1 }
 0x157   :  { %v514_v60 = vadd.f32 %v507_v59, %v326_v58  ;;  %v2486_v59 = vld [vmem:[#allocation12 + $0x30] sm:$0xff]  }
 0x158   :  { %v2079_v61 = vpop.f32.mrf.mxu1 }
 0x159   :  { %2509 = vtanh.f32 %v514_v60  ;;  %v2489_v60 = vld [vmem:[#allocation12 + $0x18] sm:$0xff]   ;;  %v2491_v61 = vld [vmem:[#allocation12 + $0x8] sm:$0xff]  }
 0x15a   :  { %v510_v63 = vpop.f32.mrf.mxu1 }
 0x15b   :  { %v515_v1 = vadd.f32 %v510_v63, %v329_v62  ;;  %v2492_v62 = vld [vmem:[#allocation12] sm:$0xff]   ;;  %v3066_v63 = vld [vmem:[#allocation13 + $0x38] sm:$0xff]  }
 0x15c   :  { %v2080_v2 = vpop.f32.mrf.mxu1 }
 0x15d   :  { %2511 = vtanh.f32 %v515_v1  ;;  %v3070_v1 = vld [vmem:[#allocation13 + $0x30] sm:$0xff]   ;;  %v3074_v2 = vld [vmem:[#allocation13 + $0x28] sm:$0xff]  }
 0x166   :  { %v2510_v3 = vpop.eup %2509 }
 0x16a   :  { %v2512_v4 = vpop.eup %2511 }
 0x16b   :  { %v2952_v5 = vpack.c.bf16 %v2512_v4, %v2510_v3  ;;  %v3078_v3 = vld [vmem:[#allocation13 + $0x20] sm:$0xff]   ;;  %v3082_v4 = vld [vmem:[#allocation13 + $0x18] sm:$0xff]  }
 0x16d   :  { %2098 = vmatmul.mubr.bf16.vlgmr.msra.gmra.mxu0 %v2952_v5 }
 0x16e   :  { %2122 = vmatpush3.bf16.msra.mxu0 %v2856_v6  ;;  %2137 = vmatprep.mubr.msk.bf16.mxu0 %vm2755_vm0, %v2754_v0 }
 0x16f   :  { %2123 = vmatprep.subr.bf16.mxu0 %v2754_v0 }
 0x172   :  { %2124 = vmatpush3.bf16.msra.mxu0 %v2860_v8 }
 0x173   :  { %2125 = vmatprep.subr.bf16.mxu0 %v2754_v0 }
 0x176   :  { %2126 = vmatpush3.bf16.msra.mxu0 %v2864_v10 }
 0x177   :  { %2127 = vmatprep.subr.bf16.mxu0 %v2754_v0 }
 0x17a   :  { %2128 = vmatpush3.bf16.msra.mxu0 %v2868_v12 }
 0x17b   :  { %2129 = vmatprep.subr.bf16.mxu0 %v2754_v0 }
 0x17e   :  { %2130 = vmatpush3.bf16.msra.mxu0 %v2870_v14 }
 0x17f   :  { %2131 = vmatprep.subr.bf16.mxu0 %v2754_v0 }
 0x182   :  { %2132 = vmatpush3.bf16.msra.mxu0 %v2874_v16 }
 0x183   :  { %2133 = vmatprep.subr.bf16.mxu0 %v2754_v0 }
 0x186   :  { %2134 = vmatpush3.bf16.msra.mxu0 %v2879_v18 }
 0x187   :  { %2135 = vmatprep.subr.bf16.mxu0 %v2754_v0 }
 0x18a   :  { %2136 = vmatpush3.bf16.msra.mxu0 %v2885_v20 }
 0x18b   :  { %2161 = vmatprep.subr.bf16.mxu0 %v2754_v0 }
 0x22d   :  { %v558_v7 = vpop.f32.mrf.mxu0 }
 0x22e   :  { %v565_v9 = vadd.f32 %v558_v7, %v334_v29  ;;  %v3090_v7 = vld [vmem:[#allocation13 + $0x8] sm:$0xff]  }
 0x22f   :  { %v2099_v11 = vpop.f32.mrf.mxu0 }
 0x230   :  { %2513 = vtanh.f32 %v565_v9  ;;  %v3094_v9 = vld [vmem:[#allocation13] sm:$0xff]  }
 0x231   :  { %v561_v13 = vpop.f32.mrf.mxu0 }
 0x232   :  { %v566_v15 = vadd.f32 %v561_v13, %v337_v32 }
 0x233   :  { %v2100_v17 = vpop.f32.mrf.mxu0 }
 0x234   :  { %2515 = vtanh.f32 %v566_v15 }
 0x23d   :  { %v2514_v19 = vpop.eup %2513 }
 0x241   :  { %v2516_v21 = vpop.eup %2515 }
 0x242   :  { %v2973_v22 = vpack.c.bf16 %v2516_v21, %v2514_v19 }
 0x244   :  { %2118 = vmatmul.mubr.bf16.vlgmr.msra.gmra.mxu1 %v2973_v22 }
 0x245   :  { %2142 = vmatpush3.bf16.msra.mxu1 %v2856_v6  ;;  %2157 = vmatprep.mubr.msk.bf16.mxu1 %vm2755_vm0, %v2754_v0 }
 0x246   :  { %2143 = vmatprep.subr.bf16.mxu1 %v2754_v0 }
 0x249   :  { %2144 = vmatpush3.bf16.msra.mxu1 %v2860_v8 }
 0x24a   :  { %2145 = vmatprep.subr.bf16.mxu1 %v2754_v0 }
 0x24d   :  { %2146 = vmatpush3.bf16.msra.mxu1 %v2864_v10 }
 0x24e   :  { %2147 = vmatprep.subr.bf16.mxu1 %v2754_v0 }
 0x251   :  { %2148 = vmatpush3.bf16.msra.mxu1 %v2868_v12 }
 0x252   :  { %2149 = vmatprep.subr.bf16.mxu1 %v2754_v0 }
 0x255   :  { %2150 = vmatpush3.bf16.msra.mxu1 %v2870_v14 }
 0x256   :  { %2151 = vmatprep.subr.bf16.mxu1 %v2754_v0 }
 0x259   :  { %2152 = vmatpush3.bf16.msra.mxu1 %v2874_v16 }
 0x25a   :  { %2153 = vmatprep.subr.bf16.mxu1 %v2754_v0 }
 0x25d   :  { %2154 = vmatpush3.bf16.msra.mxu1 %v2879_v18 }
 0x25e   :  { %2155 = vmatprep.subr.bf16.mxu1 %v2754_v0 }
 0x261   :  { %2156 = vmatpush3.bf16.msra.mxu1 %v2885_v20 }
 0x262   :  { %2181 = vmatprep.subr.bf16.mxu1 %v2754_v0 }
 0x304   :  { %v609_v23 = vpop.f32.mrf.mxu1 }
 0x305   :  { %v616_v24 = vadd.f32 %v609_v23, %v2930_v37 }
 0x306   :  { %v2119_v25 = vpop.f32.mrf.mxu1 }
 0x307   :  { %2517 = vtanh.f32 %v616_v24 }
 0x308   :  { %v612_v26 = vpop.f32.mrf.mxu1 }
 0x309   :  { %v617_v27 = vadd.f32 %v612_v26, %v2934_v41 }
 0x30a   :  { %v2120_v28 = vpop.f32.mrf.mxu1 }
 0x30b   :  { %2519 = vtanh.f32 %v617_v27 }
 0x314   :  { %v2518_v29 = vpop.eup %2517 }
 0x318   :  { %v2520_v30 = vpop.eup %2519 }
 0x319   :  { %v2996_v31 = vpack.c.bf16 %v2520_v30, %v2518_v29 }
 0x31b   :  { %2138 = vmatmul.mubr.bf16.vlgmr.msra.gmra.mxu0 %v2996_v31 }
 0x31c   :  { %2162 = vmatpush3.bf16.msra.mxu0 %v2856_v6  ;;  %2177 = vmatprep.mubr.msk.bf16.mxu0 %vm2755_vm0, %v2754_v0 }
 0x31d   :  { %2163 = vmatprep.subr.bf16.mxu0 %v2754_v0 }
 0x320   :  { %2164 = vmatpush3.bf16.msra.mxu0 %v2860_v8 }
 0x321   :  { %2165 = vmatprep.subr.bf16.mxu0 %v2754_v0 }
 0x324   :  { %2166 = vmatpush3.bf16.msra.mxu0 %v2864_v10 }
 0x325   :  { %2167 = vmatprep.subr.bf16.mxu0 %v2754_v0 }
 0x328   :  { %2168 = vmatpush3.bf16.msra.mxu0 %v2868_v12 }
 0x329   :  { %2169 = vmatprep.subr.bf16.mxu0 %v2754_v0 }
 0x32c   :  { %2170 = vmatpush3.bf16.msra.mxu0 %v2870_v14 }
 0x32d   :  { %2171 = vmatprep.subr.bf16.mxu0 %v2754_v0 }
 0x330   :  { %2172 = vmatpush3.bf16.msra.mxu0 %v2874_v16 }
 0x331   :  { %2173 = vmatprep.subr.bf16.mxu0 %v2754_v0 }
 0x334   :  { %2174 = vmatpush3.bf16.msra.mxu0 %v2879_v18 }
 0x335   :  { %2175 = vmatprep.subr.bf16.mxu0 %v2754_v0 }
 0x338   :  { %2176 = vmatpush3.bf16.msra.mxu0 %v2885_v20 }
 0x339   :  { %2201 = vmatprep.subr.bf16.mxu0 %v2754_v0 }
 0x3db   :  { %v660_v32 = vpop.f32.mrf.mxu0 }
 0x3dc   :  { %v667_v33 = vadd.f32 %v660_v32, %v2928_v35 }
 0x3dd   :  { %v2139_v34 = vpop.f32.mrf.mxu0 }
 0x3de   :  { %2521 = vtanh.f32 %v667_v33 }
 0x3df   :  { %v663_v36 = vpop.f32.mrf.mxu0 }
 0x3e0   :  { %v668_v37 = vadd.f32 %v663_v36, %v2932_v39 }
 0x3e1   :  { %v2140_v38 = vpop.f32.mrf.mxu0 }
 0x3e2   :  { %2523 = vtanh.f32 %v668_v37 }
 0x3eb   :  { %v2522_v40 = vpop.eup %2521 }
 0x3ef   :  { %v2524_v41 = vpop.eup %2523 }
 0x3f0   :  { %v3019_v42 = vpack.c.bf16 %v2524_v41, %v2522_v40 }
 0x3f2   :  { %2158 = vmatmul.mubr.bf16.vlgmr.msra.gmra.mxu1 %v3019_v42 }
 0x3f3   :  { %2182 = vmatpush3.bf16.msra.mxu1 %v2856_v6  ;;  %2197 = vmatprep.mubr.msk.bf16.mxu1 %vm2755_vm0, %v2754_v0 }
 0x3f4   :  { %2183 = vmatprep.subr.bf16.mxu1 %v2754_v0 }
 0x3f7   :  { %2184 = vmatpush3.bf16.msra.mxu1 %v2860_v8 }
 0x3f8   :  { %2185 = vmatprep.subr.bf16.mxu1 %v2754_v0 }
 0x3fb   :  { %2186 = vmatpush3.bf16.msra.mxu1 %v2864_v10 }
 0x3fc   :  { %2187 = vmatprep.subr.bf16.mxu1 %v2754_v0 }
 0x3ff   :  { %2188 = vmatpush3.bf16.msra.mxu1 %v2868_v12 }
 0x400   :  { %2189 = vmatprep.subr.bf16.mxu1 %v2754_v0 }
 0x403   :  { %2190 = vmatpush3.bf16.msra.mxu1 %v2870_v14 }
 0x404   :  { %2191 = vmatprep.subr.bf16.mxu1 %v2754_v0 }
 0x407   :  { %2192 = vmatpush3.bf16.msra.mxu1 %v2874_v16 }
 0x408   :  { %2193 = vmatprep.subr.bf16.mxu1 %v2754_v0 }
 0x40b   :  { %2194 = vmatpush3.bf16.msra.mxu1 %v2879_v18 }
 0x40c   :  { %2195 = vmatprep.subr.bf16.mxu1 %v2754_v0 }
 0x40f   :  { %2196 = vmatpush3.bf16.msra.mxu1 %v2885_v20 }
 0x4b2   :  { %v711_v35 = vpop.f32.mrf.mxu1 }
 0x4b3   :  { %v718_v39 = vadd.f32 %v711_v35, %v2938_v45 }
 0x4b4   :  { %v2159_v44 = vpop.f32.mrf.mxu1 }
 0x4b5   :  { %2525 = vtanh.f32 %v718_v39 }
 0x4b6   :  { %v714_v46 = vpop.f32.mrf.mxu1 }
 0x4b7   :  { %v719_v48 = vadd.f32 %v714_v46, %v2942_v49 }
 0x4b8   :  { %v2160_v50 = vpop.f32.mrf.mxu1 }
 0x4b9   :  { %2527 = vtanh.f32 %v719_v48 }
 0x4c2   :  { %v2526_v52 = vpop.eup %2525 }
 0x4c6   :  { %v2528_v54 = vpop.eup %2527 }
 0x4c7   :  { %v727_v56 = vpack.c.bf16 %v2528_v54, %v2526_v52 }
 0x4c9   :  { %2178 = vmatmul.mubr.bf16.vlgmr.msra.gmra.mxu0 %v727_v56 }
 0x4ca   :  { %2202 = vmatpush3.bf16.msra.mxu0 %v2856_v6  ;;  %2217 = vmatprep.mubr.msk.bf16.mxu0 %vm2755_vm0, %v2754_v0  ;;  %v2485_v6 = vld [vmem:[#allocation12 + $0x38] sm:$0xff]  }
 0x4cb   :  { %2203 = vmatprep.subr.bf16.mxu0 %v2754_v0  ;;  %2221 = vmatprep.subr.bf16.mxu1 %v2485_v6 }
 0x4ce   :  { %2204 = vmatpush3.bf16.msra.mxu0 %v2860_v8 }
 0x4cf   :  { %2205 = vmatprep.subr.bf16.mxu0 %v2754_v0 }
 0x4d2   :  { %2206 = vmatpush3.bf16.msra.mxu0 %v2864_v10 }
 0x4d3   :  { %2207 = vmatprep.subr.bf16.mxu0 %v2754_v0 }
 0x4d6   :  { %2208 = vmatpush3.bf16.msra.mxu0 %v2868_v12 }
 0x4d7   :  { %2209 = vmatprep.subr.bf16.mxu0 %v2754_v0 }
 0x4da   :  { %2210 = vmatpush3.bf16.msra.mxu0 %v2870_v14 }
 0x4db   :  { %2211 = vmatprep.subr.bf16.mxu0 %v2754_v0 }
 0x4de   :  { %2212 = vmatpush3.bf16.msra.mxu0 %v2874_v16 }
 0x4df   :  { %2213 = vmatprep.subr.bf16.mxu0 %v2754_v0 }
 0x4e2   :  { %2214 = vmatpush3.bf16.msra.mxu0 %v2879_v18 }
 0x4e3   :  { %2215 = vmatprep.subr.bf16.mxu0 %v2754_v0 }
 0x4e6   :  { %2216 = vmatpush3.bf16.msra.mxu0 %v2885_v20  ;;  %v2487_v20 = vld [vmem:[#allocation12 + $0x28] sm:$0xff]  }
 0x4e7   :  { %2253 = vmatprep.subr.bf16.mxu0 %v2754_v0 }
 0x589   :  { %v762_v8 = vpop.f32.mrf.mxu0 }
 0x58a   :  { %v769_v10 = vadd.f32 %v762_v8, %v2936_v43  ;;  %v2488_v43 = vld [vmem:[#allocation12 + $0x20] sm:$0xff]  }
 0x58b   :  { %v2179_v12 = vpop.f32.mrf.mxu0 }
 0x58c   :  { %2529 = vtanh.f32 %v769_v10 }
 0x58d   :  { %v765_v14 = vpop.f32.mrf.mxu0 }
 0x58e   :  { %v770_v45 = vadd.f32 %v765_v14, %v2940_v47  ;;  %v2490_v47 = vld [vmem:[#allocation12 + $0x10] sm:$0xff]  }
 0x58f   :  { %v2180_v16 = vpop.f32.mrf.mxu0 }
 0x590   :  { %2531 = vtanh.f32 %v770_v45 }
 0x599   :  { %v2530_v49 = vpop.eup %2529 }
 0x59d   :  { %v2532_v18 = vpop.eup %2531 }
 0x59e   :  { %v778_v58 = vpack.c.bf16 %v2532_v18, %v2530_v49 }
 0x5a0   :  { %2198 = vmatmul.mubr.bf16.vlgmr.msra.gmra.mxu1 %v778_v58 }
 0x5a1   :  { %2222 = vmatpush3.bf16.msra.mxu1 %v2485_v6  ;;  %2237 = vmatprep.mubr.bf16.mxu1 %v2952_v5  ;;  %v3086_v5 = vld [vmem:[#allocation13 + $0x10] sm:$0xff]  }
 0x5a2   :  { %2223 = vmatprep.subr.bf16.mxu1 %v2486_v59 }
 0x5a5   :  { %2224 = vmatpush3.bf16.msra.mxu1 %v2486_v59 }
 0x5a6   :  { %2225 = vmatprep.subr.bf16.mxu1 %v2487_v20 }
 0x5a9   :  { %2226 = vmatpush3.bf16.msra.mxu1 %v2487_v20 }
 0x5aa   :  { %2227 = vmatprep.subr.bf16.mxu1 %v2488_v43 }
 0x5ad   :  { %2228 = vmatpush3.bf16.msra.mxu1 %v2488_v43 }
 0x5ae   :  { %2229 = vmatprep.subr.bf16.mxu1 %v2489_v60 }
 0x5b1   :  { %2230 = vmatpush3.bf16.msra.mxu1 %v2489_v60 }
 0x5b2   :  { %2231 = vmatprep.subr.bf16.mxu1 %v2490_v47 }
 0x5b5   :  { %2232 = vmatpush3.bf16.msra.mxu1 %v2490_v47 }
 0x5b6   :  { %2233 = vmatprep.subr.bf16.mxu1 %v2491_v61 }
 0x5b9   :  { %2234 = vmatpush3.bf16.msra.mxu1 %v2491_v61 }
 0x5ba   :  { %2235 = vmatprep.subr.bf16.mxu1 %v2492_v62 }
 0x5bd   :  { %2236 = vmatpush3.bf16.msra.mxu1 %v2492_v62 }
 0x5be   :  { %2273 = vmatprep.subr.bf16.mxu1 %v2754_v0 }
 0x5c0   :  { %2238 = vmatmul.mubr.bf16.vlgmr.msra.gmra.mxu1 %v2973_v22 }
 0x5c1   :  { %2241 = vmatprep.mubr.bf16.mxu1 %v2996_v31  ;;  %2274 = vmatpush3.bf16.msra.mxu1 %v3066_v63 }
 0x5c2   :  { %2275 = vmatprep.subr.bf16.mxu1 %v2754_v0 }
 0x5c5   :  { %2276 = vmatpush3.bf16.msra.mxu1 %v3070_v1 }
 0x5c6   :  { %2277 = vmatprep.subr.bf16.mxu1 %v2754_v0 }
 0x5c8   :  { %2242 = vmatmul.mubr.bf16.gmra.mxu1 %v3019_v42 }
 0x5c9   :  { %2245 = vmatprep.mubr.bf16.mxu1 %v727_v56  ;;  %2278 = vmatpush3.bf16.msra.mxu1 %v3074_v2 }
 0x5ca   :  { %2279 = vmatprep.subr.bf16.mxu1 %v2754_v0 }
 0x5cd   :  { %2280 = vmatpush3.bf16.msra.mxu1 %v3078_v3 }
 0x5ce   :  { %2281 = vmatprep.subr.bf16.mxu1 %v2754_v0 }
 0x5d0   :  { %2246 = vmatmul.mubr.bf16.gmra.mxu1 %v778_v58 }
 0x5d1   :  { %2282 = vmatpush3.bf16.msra.mxu1 %v3082_v4 }
 0x5d2   :  { %2283 = vmatprep.subr.bf16.mxu1 %v2754_v0 }
 0x5d5   :  { %2284 = vmatpush3.bf16.msra.mxu1 %v3086_v5 }
 0x5d6   :  { %2285 = vmatprep.subr.bf16.mxu1 %v2754_v0 }
 0x5d9   :  { %2286 = vmatpush3.bf16.msra.mxu1 %v3090_v7 }
 0x5da   :  { %2287 = vmatprep.subr.bf16.mxu1 %v2754_v0 }
 0x5dd   :  { %2288 = vmatpush3.bf16.msra.mxu1 %v3094_v9 }
 0x5de   :  { %2313 = vmatprep.subr.bf16.mxu1 %v2754_v0 }
 0x660   :  { %v813_v11 = vpop.f32.mrf.mxu1 }
 0x661   :  { %v820_v13 = vadd.f32 %v813_v11, %v2946_v53  ;;  %v1785_v53 = vld [vmem:[#allocation7 + $0x1] ss:$0 sm:$0xff] }
 0x662   :  { %v2199_v15 = vpop.f32.mrf.mxu1 }
 0x663   :  { %2533 = vtanh.f32 %v820_v13 }
 0x664   :  { %v816_v17 = vpop.f32.mrf.mxu1 }
 0x665   :  { %v821_v19 = vadd.f32 %v816_v17, %v2950_v57  ;;  %v1108_v57 = vpack.c.bf16 %v1785_v53, %v1785_v53 }
 0x666   :  { %v2200_v21 = vpop.f32.mrf.mxu1 }
 0x667   :  { %2535 = vtanh.f32 %v821_v19 }
 0x670   :  { %v2534_v22 = vpop.eup %2533 }
 0x674   :  { %v2536_v23 = vpop.eup %2535 }
 0x675   :  { %v829_v24 = vpack.c.bf16 %v2536_v23, %v2534_v22 }
 0x677   :  { %2218 = vmatmul.mubr.bf16.vlgmr.msra.gmra.mxu0 %v829_v24  ;;  %2249 = vmatprep.mubr.bf16.mxu1 %v829_v24 }
 0x678   :  { %2254 = vmatpush3.bf16.msra.mxu0 %v3066_v63  ;;  %2269 = vmatprep.mubr.msk.bf16.mxu0 %vm2755_vm0, %v2754_v0 }
 0x679   :  { %2255 = vmatprep.subr.bf16.mxu0 %v2754_v0 }
 0x67c   :  { %2256 = vmatpush3.bf16.msra.mxu0 %v3070_v1 }
 0x67d   :  { %2257 = vmatprep.subr.bf16.mxu0 %v2754_v0 }
 0x680   :  { %2258 = vmatpush3.bf16.msra.mxu0 %v3074_v2  ;;  %v2239_v33 = vpop.f32.mrf.mxu1 }
 0x681   :  { %2259 = vmatprep.subr.bf16.mxu0 %v2754_v0 }
 0x682   :  { %v1008_v36 = vpop.f32.mrf.mxu1 }
 0x684   :  { %2260 = vmatpush3.bf16.msra.mxu0 %v3078_v3  ;;  %v2240_v37 = vpop.f32.mrf.mxu1 }
 0x685   :  { %2261 = vmatprep.subr.bf16.mxu0 %v2754_v0 }
 0x686   :  { %v1011_v38 = vpop.f32.mrf.mxu1 }
 0x688   :  { %2262 = vmatpush3.bf16.msra.mxu0 %v3082_v4  ;;  %v3168_v54 = vpop.f32.mrf.mxu1 }
 0x689   :  { %2263 = vmatprep.subr.bf16.mxu0 %v2754_v0 }
 0x68a   :  { %v1024_v56 = vpop.f32.mrf.mxu1 }
 0x68c   :  { %2264 = vmatpush3.bf16.msra.mxu0 %v3086_v5  ;;  %v3170_v6 = vpop.f32.mrf.mxu1 }
 0x68d   :  { %2265 = vmatprep.subr.bf16.mxu0 %v2754_v0 }
 0x68e   :  { %v1027_v8 = vpop.f32.mrf.mxu1 }
 0x690   :  { %2266 = vmatpush3.bf16.msra.mxu0 %v3090_v7  ;;  %v3172_v10 = vpop.f32.mrf.mxu1 }
 0x691   :  { %2267 = vmatprep.subr.bf16.mxu0 %v2754_v0 }
 0x692   :  { %v3174_v12 = vpop.f32.mrf.mxu1 }
 0x694   :  { %2268 = vmatpush3.bf16.msra.mxu0 %v3094_v9  ;;  %v3176_v14 = vpop.f32.mrf.mxu1 }
 0x695   :  { %2293 = vmatprep.subr.bf16.mxu0 %v2754_v0 }
 0x696   :  { %v3178_v45 = vpop.f32.mrf.mxu1 }
 0x697   :  { %2270 = vmatmul.mubr.bf16.vlgmr.msra.gmra.mxu0 %v1108_v57 }
 0x698   :  { %2294 = vmatpush3.bf16.msra.mxu0 %v3066_v63  ;;  %2309 = vmatprep.mubr.msk.bf16.mxu0 %vm2755_vm0, %v2754_v0 }
 0x699   :  { %2295 = vmatprep.subr.bf16.mxu0 %v2754_v0 }
 0x69c   :  { %2296 = vmatpush3.bf16.msra.mxu0 %v3070_v1 }
 0x69d   :  { %2297 = vmatprep.subr.bf16.mxu0 %v2754_v0 }
 0x6a0   :  { %2298 = vmatpush3.bf16.msra.mxu0 %v3074_v2 }
 0x6a1   :  { %2299 = vmatprep.subr.bf16.mxu0 %v2754_v0 }
 0x6a4   :  { %2300 = vmatpush3.bf16.msra.mxu0 %v3078_v3 }
 0x6a5   :  { %2301 = vmatprep.subr.bf16.mxu0 %v2754_v0 }
 0x6a8   :  { %2302 = vmatpush3.bf16.msra.mxu0 %v3082_v4 }
 0x6a9   :  { %2303 = vmatprep.subr.bf16.mxu0 %v2754_v0 }
 0x6ac   :  { %2304 = vmatpush3.bf16.msra.mxu0 %v3086_v5 }
 0x6ad   :  { %2305 = vmatprep.subr.bf16.mxu0 %v2754_v0 }
 0x6b0   :  { %2306 = vmatpush3.bf16.msra.mxu0 %v3090_v7 }
 0x6b1   :  { %2307 = vmatprep.subr.bf16.mxu0 %v2754_v0 }
 0x6b4   :  { %2308 = vmatpush3.bf16.msra.mxu0 %v3094_v9 }
 0x6b5   :  { %2333 = vmatprep.subr.bf16.mxu0 %v2754_v0 }
 0x737   :  { %v864_v25 = vpop.f32.mrf.mxu0 }
 0x738   :  { %v871_v26 = vadd.f32 %v864_v25, %v2944_v51  ;;  %v3143_v51 = vld [vmem:[%s3326_s7] ss:$0 sm:$0xff] }
 0x739   :  { %v2219_v27 = vpop.f32.mrf.mxu0  ;;  %v1012_v35 = vadd.f32 %v3143_v51, %v1011_v38  ;;  %v1017_v59 = vadd.f32 %v2239_v33, %v3143_v51  ;;  %v1020_v47 = vadd.f32 %v2240_v37, %v3143_v51  ;;  %v1025_v19 = vadd.f32 %v3143_v51, %v1024_v56 }
 0x73a   :  { %2537 = vtanh.f32 %v871_v26  ;;  %v1028_v24 = vadd.f32 %v3143_v51, %v1027_v8  ;;  %v1036_v33 = vadd.f32 %v3170_v6, %v3143_v51  ;;  %v1052_v8 = vadd.f32 %v3176_v14, %v3143_v51  ;;  %v2505_v14 = vld [vmem:[#allocation15 + $0x18] sm:$0xff]  }
 0x73b   :  { %v867_v28 = vpop.f32.mrf.mxu0 }
 0x73c   :  { %v872_v29 = vadd.f32 %v867_v28, %v2948_v55  ;;  %v1009_v55 = vadd.f32 %v3143_v51, %v1008_v36 }
 0x73d   :  { %v2220_v30 = vpop.f32.mrf.mxu0 }
 0x73e   :  { %2539 = vtanh.f32 %v872_v29  ;;  %v1033_v29 = vadd.f32 %v3168_v54, %v3143_v51 }
 0x747   :  { %v2538_v31 = vpop.eup %2537 }
 0x74b   :  { %v2540_v32 = vpop.eup %2539 }
 0x74c   :  { %v919_v34 = vpack.c.bf16 %v2540_v32, %v2538_v31 }
 0x74e   :  { %2250 = vmatmul.mubr.bf16.gmra.mxu1 %v919_v34 }
 0x74f   :  { %2289 = vmatprep.mubr.msk.bf16.mxu1 %vm2755_vm0, %v2754_v0 }
 0x757   :  { %v1191_v40 = vpop.f32.mrf.mxu0 }
 0x758   :  { %v1198_v41 = vadd.f32 %v1191_v40, %v1009_v55 }
 0x759   :  { %v2271_v42 = vpop.f32.mrf.mxu0 }
 0x75a   :  { %2541 = vtanh.f32 %v1198_v41  ;;  %v1041_v41 = vadd.f32 %v3143_v51, %v3174_v12 }
 0x75b   :  { %v1194_v39 = vpop.f32.mrf.mxu0 }
 0x75c   :  { %v1199_v44 = vadd.f32 %v1194_v39, %v1012_v35 }
 0x75d   :  { %v2272_v46 = vpop.f32.mrf.mxu0 }
 0x75e   :  { %2543 = vtanh.f32 %v1199_v44  ;;  %v1044_v44 = vadd.f32 %v3143_v51, %v3178_v45 }
 0x767   :  { %v2542_v48 = vpop.eup %2541 }
 0x76b   :  { %v2544_v50 = vpop.eup %2543 }
 0x76c   :  { %v3147_v52 = vpack.c.bf16 %v2544_v50, %v2542_v48 }
 0x76e   :  { %2290 = vmatmul.mubr.bf16.vlgmr.msra.gmra.mxu1 %v3147_v52 }
 0x76f   :  { %2314 = vmatpush3.bf16.msra.mxu1 %v3066_v63  ;;  %2329 = vmatprep.mubr.msk.bf16.mxu1 %vm2755_vm0, %v2754_v0 }
 0x770   :  { %2315 = vmatprep.subr.bf16.mxu1 %v2754_v0 }
 0x773   :  { %2316 = vmatpush3.bf16.msra.mxu1 %v3070_v1 }
 0x774   :  { %2317 = vmatprep.subr.bf16.mxu1 %v2754_v0 }
 0x777   :  { %2318 = vmatpush3.bf16.msra.mxu1 %v3074_v2 }
 0x778   :  { %2319 = vmatprep.subr.bf16.mxu1 %v2754_v0 }
 0x77b   :  { %2320 = vmatpush3.bf16.msra.mxu1 %v3078_v3 }
 0x77c   :  { %2321 = vmatprep.subr.bf16.mxu1 %v2754_v0 }
 0x77f   :  { %2322 = vmatpush3.bf16.msra.mxu1 %v3082_v4 }
 0x780   :  { %2323 = vmatprep.subr.bf16.mxu1 %v2754_v0 }
 0x783   :  { %2324 = vmatpush3.bf16.msra.mxu1 %v3086_v5 }
 0x784   :  { %2325 = vmatprep.subr.bf16.mxu1 %v2754_v0 }
 0x787   :  { %2326 = vmatpush3.bf16.msra.mxu1 %v3090_v7 }
 0x788   :  { %2327 = vmatprep.subr.bf16.mxu1 %v2754_v0 }
 0x78b   :  { %2328 = vmatpush3.bf16.msra.mxu1 %v3094_v9 }
 0x78c   :  { %2353 = vmatprep.subr.bf16.mxu1 %v2754_v0 }
 0x80e   :  { %v3180_v16 = vpop.f32.mrf.mxu1 }
 0x810   :  { %v3182_v49 = vpop.f32.mrf.mxu1 }
 0x812   :  { %v3184_v18 = vpop.f32.mrf.mxu1 }
 0x814   :  { %v3186_v58 = vpop.f32.mrf.mxu1 }
 0x82e   :  { %v1241_v20 = vpop.f32.mrf.mxu1 }
 0x82f   :  { %v1248_v43 = vadd.f32 %v1241_v20, %v1017_v59  ;;  %v2504_v20 = vld [vmem:[#allocation15 + $0x20] sm:$0xff]  }
 0x830   :  { %v2291_v60 = vpop.f32.mrf.mxu1 }
 0x831   :  { %2545 = vtanh.f32 %v1248_v43  ;;  %v2506_v43 = vld [vmem:[#allocation15 + $0x10] sm:$0xff]   ;;  %v2507_v60 = vld [vmem:[#allocation15 + $0x8] sm:$0xff]  }
 0x832   :  { %v1244_v61 = vpop.f32.mrf.mxu1 }
 0x833   :  { %v1249_v62 = vadd.f32 %v1244_v61, %v1020_v47  ;;  %v2508_v47 = vld [vmem:[#allocation15] sm:$0xff]  }
 0x834   :  { %v2292_v11 = vpop.f32.mrf.mxu1 }
 0x835   :  { %2547 = vtanh.f32 %v1249_v62 }
 0x83e   :  { %v2546_v13 = vpop.eup %2545 }
 0x842   :  { %v2548_v15 = vpop.eup %2547 }
 0x843   :  { %v3190_v17 = vpack.c.bf16 %v2548_v15, %v2546_v13  ;;  %v1060_v13 = vadd.f32 %v3143_v51, %v3186_v58 }
 0x845   :  { %2310 = vmatmul.mubr.bf16.vlgmr.msra.gmra.mxu0 %v3190_v17 }
 0x846   :  { %2334 = vmatpush3.bf16.msra.mxu0 %v3066_v63  ;;  %2349 = vmatprep.mubr.msk.bf16.mxu0 %vm2755_vm0, %v2754_v0 }
 0x847   :  { %2335 = vmatprep.subr.bf16.mxu0 %v2754_v0 }
 0x84a   :  { %2336 = vmatpush3.bf16.msra.mxu0 %v3070_v1 }
 0x84b   :  { %2337 = vmatprep.subr.bf16.mxu0 %v2754_v0 }
 0x84e   :  { %2338 = vmatpush3.bf16.msra.mxu0 %v3074_v2 }
 0x84f   :  { %2339 = vmatprep.subr.bf16.mxu0 %v2754_v0 }
 0x852   :  { %2340 = vmatpush3.bf16.msra.mxu0 %v3078_v3 }
 0x853   :  { %2341 = vmatprep.subr.bf16.mxu0 %v2754_v0 }
 0x856   :  { %2342 = vmatpush3.bf16.msra.mxu0 %v3082_v4 }
 0x857   :  { %2343 = vmatprep.subr.bf16.mxu0 %v2754_v0 }
 0x85a   :  { %2344 = vmatpush3.bf16.msra.mxu0 %v3086_v5 }
 0x85b   :  { %2345 = vmatprep.subr.bf16.mxu0 %v2754_v0 }
 0x85e   :  { %2346 = vmatpush3.bf16.msra.mxu0 %v3090_v7 }
 0x85f   :  { %2347 = vmatprep.subr.bf16.mxu0 %v2754_v0 }
 0x862   :  { %2348 = vmatpush3.bf16.msra.mxu0 %v3094_v9 }
 0x863   :  { %2373 = vmatprep.subr.bf16.mxu0 %v2754_v0 }
 0x905   :  { %v1291_v21 = vpop.f32.mrf.mxu0 }
 0x906   :  { %v1298_v22 = vadd.f32 %v1291_v21, %v1025_v19 }
 0x907   :  { %v2311_v23 = vpop.f32.mrf.mxu0 }
 0x908   :  { %2549 = vtanh.f32 %v1298_v22 }
 0x909   :  { %v1294_v53 = vpop.f32.mrf.mxu0 }
 0x90a   :  { %v1299_v57 = vadd.f32 %v1294_v53, %v1028_v24 }
 0x90b   :  { %v2312_v25 = vpop.f32.mrf.mxu0 }
 0x90c   :  { %2551 = vtanh.f32 %v1299_v57 }
 0x915   :  { %v2550_v26 = vpop.eup %2549 }
 0x919   :  { %v2552_v27 = vpop.eup %2551 }
 0x91a   :  { %v3213_v28 = vpack.c.bf16 %v2552_v27, %v2550_v26 }
 0x91c   :  { %2330 = vmatmul.mubr.bf16.vlgmr.msra.gmra.mxu1 %v3213_v28 }
 0x91d   :  { %2354 = vmatpush3.bf16.msra.mxu1 %v3066_v63  ;;  %2369 = vmatprep.mubr.msk.bf16.mxu1 %vm2755_vm0, %v2754_v0 }
 0x91e   :  { %2355 = vmatprep.subr.bf16.mxu1 %v2754_v0 }
 0x921   :  { %2356 = vmatpush3.bf16.msra.mxu1 %v3070_v1 }
 0x922   :  { %2357 = vmatprep.subr.bf16.mxu1 %v2754_v0 }
 0x925   :  { %2358 = vmatpush3.bf16.msra.mxu1 %v3074_v2 }
 0x926   :  { %2359 = vmatprep.subr.bf16.mxu1 %v2754_v0 }
 0x929   :  { %2360 = vmatpush3.bf16.msra.mxu1 %v3078_v3 }
 0x92a   :  { %2361 = vmatprep.subr.bf16.mxu1 %v2754_v0 }
 0x92d   :  { %2362 = vmatpush3.bf16.msra.mxu1 %v3082_v4 }
 0x92e   :  { %2363 = vmatprep.subr.bf16.mxu1 %v2754_v0 }
 0x931   :  { %2364 = vmatpush3.bf16.msra.mxu1 %v3086_v5 }
 0x932   :  { %2365 = vmatprep.subr.bf16.mxu1 %v2754_v0 }
 0x935   :  { %2366 = vmatpush3.bf16.msra.mxu1 %v3090_v7 }
 0x936   :  { %2367 = vmatprep.subr.bf16.mxu1 %v2754_v0 }
 0x939   :  { %2368 = vmatpush3.bf16.msra.mxu1 %v3094_v9 }
 0x93a   :  { %2393 = vmatprep.subr.bf16.mxu1 %v2754_v0 }
 0x9dc   :  { %v1341_v30 = vpop.f32.mrf.mxu1 }
 0x9dd   :  { %v1348_v31 = vadd.f32 %v1341_v30, %v1033_v29 }
 0x9de   :  { %v2331_v32 = vpop.f32.mrf.mxu1 }
 0x9df   :  { %2553 = vtanh.f32 %v1348_v31 }
 0x9e0   :  { %v1344_v34 = vpop.f32.mrf.mxu1 }
 0x9e1   :  { %v1349_v36 = vadd.f32 %v1344_v34, %v1036_v33 }
 0x9e2   :  { %v2332_v37 = vpop.f32.mrf.mxu1 }
 0x9e3   :  { %2555 = vtanh.f32 %v1349_v36 }
 0x9ec   :  { %v2554_v55 = vpop.eup %2553 }
 0x9f0   :  { %v2556_v38 = vpop.eup %2555 }
 0x9f1   :  { %v3238_v40 = vpack.c.bf16 %v2556_v38, %v2554_v55 }
 0x9f3   :  { %2350 = vmatmul.mubr.bf16.vlgmr.msra.gmra.mxu0 %v3238_v40 }
 0x9f4   :  { %2374 = vmatpush3.bf16.msra.mxu0 %v3066_v63  ;;  %2389 = vmatprep.mubr.msk.bf16.mxu0 %vm2755_vm0, %v2754_v0 }
 0x9f5   :  { %2375 = vmatprep.subr.bf16.mxu0 %v2754_v0 }
 0x9f8   :  { %2376 = vmatpush3.bf16.msra.mxu0 %v3070_v1 }
 0x9f9   :  { %2377 = vmatprep.subr.bf16.mxu0 %v2754_v0 }
 0x9fc   :  { %2378 = vmatpush3.bf16.msra.mxu0 %v3074_v2 }
 0x9fd   :  { %2379 = vmatprep.subr.bf16.mxu0 %v2754_v0 }
 0xa00   :  { %2380 = vmatpush3.bf16.msra.mxu0 %v3078_v3 }
 0xa01   :  { %2381 = vmatprep.subr.bf16.mxu0 %v2754_v0 }
 0xa04   :  { %2382 = vmatpush3.bf16.msra.mxu0 %v3082_v4 }
 0xa05   :  { %2383 = vmatprep.subr.bf16.mxu0 %v2754_v0 }
 0xa08   :  { %2384 = vmatpush3.bf16.msra.mxu0 %v3086_v5 }
 0xa09   :  { %2385 = vmatprep.subr.bf16.mxu0 %v2754_v0 }
 0xa0c   :  { %2386 = vmatpush3.bf16.msra.mxu0 %v3090_v7 }
 0xa0d   :  { %2387 = vmatprep.subr.bf16.mxu0 %v2754_v0 }
 0xa10   :  { %2388 = vmatpush3.bf16.msra.mxu0 %v3094_v9 }
 0xab3   :  { %v1391_v42 = vpop.f32.mrf.mxu0 }
 0xab4   :  { %v1398_v35 = vadd.f32 %v1391_v42, %v1041_v41 }
 0xab5   :  { %v2351_v39 = vpop.f32.mrf.mxu0 }
 0xab6   :  { %2557 = vtanh.f32 %v1398_v35 }
 0xab7   :  { %v1394_v46 = vpop.f32.mrf.mxu0 }
 0xab8   :  { %v1399_v48 = vadd.f32 %v1394_v46, %v1044_v44  ;;  %v1065_v46 = vadd.f32 %v3180_v16, %v3143_v51 }
 0xab9   :  { %v2352_v50 = vpop.f32.mrf.mxu0 }
 0xaba   :  { %2559 = vtanh.f32 %v1399_v48 }
 0xac3   :  { %v2558_v54 = vpop.eup %2557 }
 0xac7   :  { %v2560_v56 = vpop.eup %2559 }
 0xac8   :  { %v1406_v6 = vpack.c.bf16 %v2560_v56, %v2558_v54  ;;  %v1068_v56 = vadd.f32 %v3184_v18, %v3143_v51 }
 0xaca   :  { %2370 = vmatmul.mubr.bf16.vlgmr.msra.gmra.mxu1 %v1406_v6 }
 0xacb   :  { %2394 = vmatpush3.bf16.msra.mxu1 %v3066_v63  ;;  %2409 = vmatprep.mubr.msk.bf16.mxu1 %vm2755_vm0, %v2754_v0  ;;  %v2501_v63 = vld [vmem:[#allocation15 + $0x38] sm:$0xff]  }
 0xacc   :  { %2395 = vmatprep.subr.bf16.mxu1 %v2754_v0  ;;  %2413 = vmatprep.subr.bf16.mxu0 %v2501_v63 }
 0xacf   :  { %2396 = vmatpush3.bf16.msra.mxu1 %v3070_v1  ;;  %v1049_v1 = vadd.f32 %v3172_v10, %v3143_v51  ;;  %v2503_v10 = vld [vmem:[#allocation15 + $0x28] sm:$0xff]  }
 0xad0   :  { %2397 = vmatprep.subr.bf16.mxu1 %v2754_v0 }
 0xad3   :  { %2398 = vmatpush3.bf16.msra.mxu1 %v3074_v2 }
 0xad4   :  { %2399 = vmatprep.subr.bf16.mxu1 %v2754_v0 }
 0xad7   :  { %2400 = vmatpush3.bf16.msra.mxu1 %v3078_v3 }
 0xad8   :  { %2401 = vmatprep.subr.bf16.mxu1 %v2754_v0 }
 0xadb   :  { %2402 = vmatpush3.bf16.msra.mxu1 %v3082_v4 }
 0xadc   :  { %2403 = vmatprep.subr.bf16.mxu1 %v2754_v0 }
 0xadf   :  { %2404 = vmatpush3.bf16.msra.mxu1 %v3086_v5 }
 0xae0   :  { %2405 = vmatprep.subr.bf16.mxu1 %v2754_v0 }
 0xae3   :  { %2406 = vmatpush3.bf16.msra.mxu1 %v3090_v7 }
 0xae4   :  { %2407 = vmatprep.subr.bf16.mxu1 %v2754_v0 }
 0xae7   :  { %2408 = vmatpush3.bf16.msra.mxu1 %v3094_v9  ;;  %v2502_v9 = vld [vmem:[#allocation15 + $0x30] sm:$0xff]  }
 0xb8a   :  { %v1441_v2 = vpop.f32.mrf.mxu1 }
 0xb8b   :  { %v1448_v3 = vadd.f32 %v1441_v2, %v1049_v1 }
 0xb8c   :  { %v2371_v4 = vpop.f32.mrf.mxu1 }
 0xb8d   :  { %2561 = vtanh.f32 %v1448_v3 }
 0xb8e   :  { %v1444_v5 = vpop.f32.mrf.mxu1 }
 0xb8f   :  { %v1449_v12 = vadd.f32 %v1444_v5, %v1052_v8 }
 0xb90   :  { %v2372_v45 = vpop.f32.mrf.mxu1 }
 0xb91   :  { %2563 = vtanh.f32 %v1449_v12 }
 0xb9a   :  { %v2562_v7 = vpop.eup %2561 }
 0xb9e   :  { %v2564_v0 = vpop.eup %2563 }
 0xb9f   :  { %v1456_v59 = vpack.c.bf16 %v2564_v0, %v2562_v7 }
 0xba1   :  { %2390 = vmatmul.mubr.bf16.vlgmr.msra.gmra.mxu0 %v1456_v59 }
 0xba2   :  { %2414 = vmatpush3.bf16.msra.mxu0 %v2501_v63  ;;  %2429 = vmatprep.mubr.bf16.mxu0 %v3147_v52  ;;  %v1057_v52 = vadd.f32 %v3143_v51, %v3182_v49  ;;  %v3294_v49 = vld [vmem:[%s3328_s9] ss:$0 sm:$0xff]  ;;  %s2756_s9 = smov [#allocation16]  }
 0xba3   :  { %2415 = vmatprep.subr.bf16.mxu0 %v2502_v9  ;;  %s1769_s1 = sshll.u32 %s2756_s9, 4  ;;  %s1770_s1 = int_to_ptr.vmem [resolvable:$true] %s1769_s1 }
 0xba4   :  { %s2713_s29 = scalar_lea.vmem %s1770_s1, 2048  ;;  %p2718_p8 = scmp.lt.s32.totalorder %s1770_s1, %s1770_s1 }
 0xba5   :  { %p2714_p7 = scmp.ne.s32.totalorder %s1770_s1, %s2713_s29  ;;  %p2719_p9 = scmp.lt.s32.totalorder %s2713_s29, %s2713_s29 }
 0xba6   :  { %2416 = vmatpush3.bf16.msra.mxu0 %v2502_v9 }
 0xba7   :  { %2417 = vmatprep.subr.bf16.mxu0 %v2503_v10  ;;  %p2720_p10 = por %p2719_p9, %p2718_p8 }
 0xba9   :  { %p2721_p11 = pnand %p2720_p10, %p2714_p7 }
 0xbaa   :  { %2418 = vmatpush3.bf16.msra.mxu0 %v2503_v10 }
 0xbab   :  { %2419 = vmatprep.subr.bf16.mxu0 %v2504_v20 }
 0xbae   :  { %2420 = vmatpush3.bf16.msra.mxu0 %v2504_v20 }
 0xbaf   :  { %2421 = vmatprep.subr.bf16.mxu0 %v2505_v14 }
 0xbb2   :  { %2422 = vmatpush3.bf16.msra.mxu0 %v2505_v14 }
 0xbb3   :  { %2423 = vmatprep.subr.bf16.mxu0 %v2506_v43 }
 0xbb6   :  { %2424 = vmatpush3.bf16.msra.mxu0 %v2506_v43 }
 0xbb7   :  { %2425 = vmatprep.subr.bf16.mxu0 %v2507_v60 }
 0xbba   :  { %2426 = vmatpush3.bf16.msra.mxu0 %v2507_v60 }
 0xbbb   :  { %2427 = vmatprep.subr.bf16.mxu0 %v2508_v47 }
 0xbbe   :  { %2428 = vmatpush3.bf16.msra.mxu0 %v2508_v47 }
 0xbc1   :  { %2430 = vmatmul.mubr.bf16.vlgmr.msra.gmra.mxu0 %v3190_v17 }
 0xbc2   :  { %2433 = vmatprep.mubr.bf16.mxu0 %v3213_v28 }
 0xbc9   :  { %2434 = vmatmul.mubr.bf16.gmra.mxu0 %v3238_v40 }
 0xbca   :  { %2437 = vmatprep.mubr.bf16.mxu0 %v1406_v6 }
 0xbd1   :  { %2438 = vmatmul.mubr.bf16.gmra.mxu0 %v1456_v59 }
 0xc61   :  { %v1491_v61 = vpop.f32.mrf.mxu0 }
 0xc62   :  { %v1498_v62 = vadd.f32 %v1491_v61, %v1057_v52 }
 0xc63   :  { %v2391_v11 = vpop.f32.mrf.mxu0 }
 0xc64   :  { %2565 = vtanh.f32 %v1498_v62 }
 0xc65   :  { %v1494_v15 = vpop.f32.mrf.mxu0 }
 0xc66   :  { %v1499_v19 = vadd.f32 %v1494_v15, %v1060_v13 }
 0xc67   :  { %v2392_v21 = vpop.f32.mrf.mxu0 }
 0xc68   :  { %2567 = vtanh.f32 %v1499_v19 }
 0xc71   :  { %v2566_v17 = vpop.eup %2565 }
 0xc75   :  { %v2568_v22 = vpop.eup %2567 }
 0xc76   :  { %v1506_v23 = vpack.c.bf16 %v2568_v22, %v2566_v17 }
 0xc78   :  { %2410 = vmatmul.mubr.bf16.vlgmr.msra.gmra.mxu1 %v1506_v23  ;;  %2441 = vmatprep.mubr.bf16.mxu0 %v1506_v23 }
 0xc81   :  { %v2431_v24 = vpop.f32.mrf.mxu0 }
 0xc82   :  { %v1694_v53 = vadd.f32 %v2431_v24, %v3294_v49 }
 0xc83   :  { %v1685_v57 = vpop.f32.mrf.mxu0 }
 0xc84   :  { %1750 = vst [vmem:[#allocation16 + $0x10] sm:$0xff] %v1694_v53  ;;  %v1686_v58 = vadd.f32 %v3294_v49, %v1685_v57 }
 0xc85   :  { %v2432_v25 = vpop.f32.mrf.mxu0 }
 0xc86   :  { %1748 = vst [vmem:[#allocation16] sm:$0xff] %v1686_v58  ;;  %v1697_v26 = vadd.f32 %v2432_v25, %v3294_v49 }
 0xc87   :  { %v1688_v27 = vpop.f32.mrf.mxu0 }
 0xc88   :  { %1751 = vst [vmem:[#allocation16 + $0x18] sm:$0xff] %v1697_v26  ;;  %v1689_v28 = vadd.f32 %v3294_v49, %v1688_v27 }
 0xc89   :  { %v2435_v29 = vpop.f32.mrf.mxu0 }
 0xc8a   :  { %1749 = vst [vmem:[#allocation16 + $0x8] sm:$0xff] %v1689_v28  ;;  %v1710_v30 = vadd.f32 %v2435_v29, %v3294_v49 }
 0xc8b   :  { %v1701_v31 = vpop.f32.mrf.mxu0 }
 0xc8c   :  { %1754 = vst [vmem:[#allocation16 + $0x30] sm:$0xff] %v1710_v30  ;;  %v1702_v32 = vadd.f32 %v3294_v49, %v1701_v31 }
 0xc8d   :  { %v2436_v33 = vpop.f32.mrf.mxu0 }
 0xc8e   :  { %1752 = vst [vmem:[#allocation16 + $0x20] sm:$0xff] %v1702_v32  ;;  %v1713_v34 = vadd.f32 %v2436_v33, %v3294_v49 }
 0xc8f   :  { %v1704_v36 = vpop.f32.mrf.mxu0 }
 0xc90   :  { %1755 = vst [vmem:[#allocation16 + $0x38] sm:$0xff] %v1713_v34  ;;  %v1705_v37 = vadd.f32 %v3294_v49, %v1704_v36 }
 0xc91   :  { %v2439_v55 = vpop.f32.mrf.mxu0 }
 0xc92   :  { %1753 = vst [vmem:[#allocation16 + $0x28] sm:$0xff] %v1705_v37  ;;  %v1726_v38 = vadd.f32 %v2439_v55, %v3294_v49 }
 0xc93   :  { %v1717_v40 = vpop.f32.mrf.mxu0 }
 0xc94   :  { %1758 = vst [vmem:[#allocation16 + $0x50] sm:$0xff] %v1726_v38  ;;  %v1718_v41 = vadd.f32 %v3294_v49, %v1717_v40 }
 0xc95   :  { %v2440_v42 = vpop.f32.mrf.mxu0 }
 0xc96   :  { %1756 = vst [vmem:[#allocation16 + $0x40] sm:$0xff] %v1718_v41  ;;  %v1729_v35 = vadd.f32 %v2440_v42, %v3294_v49 }
 0xc97   :  { %v1720_v39 = vpop.f32.mrf.mxu0 }
 0xc98   :  { %1759 = vst [vmem:[#allocation16 + $0x58] sm:$0xff] %v1729_v35  ;;  %v1721_v44 = vadd.f32 %v3294_v49, %v1720_v39 }
 0xc9a   :  { %1757 = vst [vmem:[#allocation16 + $0x48] sm:$0xff] %v1721_v44 }
 0xd38   :  { %v1541_v48 = vpop.f32.mrf.mxu1 }
 0xd39   :  { %v1548_v50 = vadd.f32 %v1541_v48, %v1065_v46 }
 0xd3a   :  { %v2411_v54 = vpop.f32.mrf.mxu1 }
 0xd3b   :  { %2569 = vtanh.f32 %v1548_v50 }
 0xd3c   :  { %v1544_v6 = vpop.f32.mrf.mxu1 }
 0xd3d   :  { %v1549_v63 = vadd.f32 %v1544_v6, %v1068_v56 }
 0xd3e   :  { %v2412_v1 = vpop.f32.mrf.mxu1 }
 0xd3f   :  { %2571 = vtanh.f32 %v1549_v63 }
 0xd48   :  { %v2570_v2 = vpop.eup %2569 }
 0xd4c   :  { %v2572_v3 = vpop.eup %2571 }
 0xd4d   :  { %v1596_v4 = vpack.c.bf16 %v2572_v3, %v2570_v2 }
 0xd4f   :  { %2442 = vmatmul.mubr.bf16.gmra.mxu0 %v1596_v4 }
 0xe0f   :  { %v2443_v8 = vpop.f32.mrf.mxu0 }
 0xe10   :  { %v1742_v5 = vadd.f32 %v2443_v8, %v3294_v49 }
 0xe11   :  { %v1733_v12 = vpop.f32.mrf.mxu0 }
 0xe12   :  { %1762 = vst [vmem:[#allocation16 + $0x70] sm:$0xff] %v1742_v5  ;;  %v1734_v16 = vadd.f32 %v3294_v49, %v1733_v12 }
 0xe13   :  { %v2444_v45 = vpop.f32.mrf.mxu0 }
 0xe14   :  { %1760 = vst [vmem:[#allocation16 + $0x60] sm:$0xff] %v1734_v16  ;;  %v1745_v51 = vadd.f32 %v2444_v45, %v3294_v49 }
 0xe15   :  { %v1736_v18 = vpop.f32.mrf.mxu0 }
 0xe16   :  { %1763 = vst [vmem:[#allocation16 + $0x78] sm:$0xff] %v1745_v51  ;;  %v1737_v7 = vadd.f32 %v3294_v49, %v1736_v18 }
 0xe18   :  { %1761 = vst [vmem:[#allocation16 + $0x68] sm:$0xff] %v1737_v7 }
 0xe19   :  { %2724 = shalt.err (!%p2721_p11)
}
 0xe1a   :  { %s2757_s30 = smov 128   ;;  %s2758_s11 = smov 8  }
 0xe1b   :  { %1775 = dma.vmem_to_hbm [thread:$0]  %s1770_s1, 2048, %s3329_s10, [#allocation6], %s2757_s30, %s2757_s30, %s2758_s11  }
 0xe1c   :  { %2741 = dma.done.wait [#allocation6], 2048  }
 0xe1d   :  { %2742 = vsyncadd [#allocation6], 4294965248 }
 0xe1e   :  { %1779 = vsyncpa [#allocation5], 1 }
 0xe1f   :  { %1780 = vsyncpa [#allocation8], 1 }
 0xe20   :  { %1781 = vsyncpa [#allocation11], 1 }
 0xe21   :  { %1782 = vsyncpa [#allocation14], 1 }
 0xe22   :  { %1783 = vsyncpa [#allocation6], 1 }

</bundles_post_ra>
